<compile_context>
chip_gen: v7x
topology: tpu7x:2x2x1
jax: 0.10.0
libtpu: 0.0.40
codegen_flags: <defaults>
</compile_context>

<pallas_src>
import jax
import jax.numpy as jnp
from jax.experimental import pallas as pl
from jax.experimental.pallas import tpu as pltpu

KH = KW = 7
PAD = 3
_LANES = 128


def _round_up(v, m):
    return (v + m - 1) // m * m


def _make_spatial_attn_kernel(NB, C, H, W, OFF, L):
    HW = H * W
    NB2 = 2 * NB
    ROWL = HW + KW - 1
    # Tail-halo zero starts lane-aligned; the interior store issued right after
    # overwrites the overlap, so both halo stores are full-width unmasked vst.
    TAILZ_START = OFF + (HW // _LANES) * _LANES
    TAILZ = L - TAILZ_START
    CHUNK = min(C, 16)

    def kernel(w_ref, x_ref, mask_ref, o_ref, pad_ref):
        # w_ref   : SMEM (2*7*7 + 1,) f32  conv weights (avg-ch pre-scaled by 1/C) + bias
        # x_ref   : VMEM (NB, C, H*W)      NB batch-tiled images, lane-dense
        # mask_ref: VMEM (7, H*W) f32      0/1 column-validity mask per kx tap
        # o_ref   : VMEM (NB, C, H*W)
        # pad_ref : VMEM (2*NB, L) f32     flat [sum_0..sum_{NB-1}, max_0..max_{NB-1}]
        #                                  planes with zero vertical halos

        # ---- fused channel sum + max: single pass over x, per-chunk f32 cast.
        s = jnp.zeros((NB, HW), jnp.float32)
        m = jnp.full((NB, HW), -jnp.inf, jnp.float32)
        for c0 in range(0, C, CHUNK):
            ch = min(CHUNK, C - c0)
            chunk = x_ref[:, pl.ds(c0, ch), :].astype(jnp.float32)   # (NB, ch, HW)
            s = s + jnp.sum(chunk, axis=1)
            m = jnp.maximum(m, jnp.max(chunk, axis=1))
        # 1/C is folded into the channel-0 weights in the wrapper, so the raw
        # channel sum goes into the padded plane.

        # ---- zero halos (lane-aligned full-width stores), one interior store.
        pad_ref[:, pl.ds(0, OFF)] = jnp.zeros((NB2, OFF), jnp.float32)
        pad_ref[:, pl.ds(TAILZ_START, TAILZ)] = jnp.zeros((NB2, TAILZ), jnp.float32)
        pad_ref[:, pl.ds(OFF, HW)] = jnp.concatenate([s, m], axis=0)

        # ---- 7x7 conv: 7 (2*NB, HW+6) row reads, 49 per-sublane FMAs on the
        # UNSHIFTED rows, only 7 lane-misaligned slices applied afterwards.
        partials = [jnp.zeros((NB2, ROWL), jnp.float32) for _ in range(KW)]
        for ky in range(KH):
            start = OFF + (ky - PAD) * W - PAD
            rows = pad_ref[:, pl.ds(start, ROWL)]                    # (2NB, HW+6)
            for kx in range(KW):
                t = ky * KW + kx
                wv = jnp.concatenate(
                    [jnp.full((NB, 1), w_ref[t], jnp.float32),           # avg/Cs
                     jnp.full((NB, 1), w_ref[KH * KW + t], jnp.float32)],  # max
                    axis=0)                                          # (2NB, 1)
                partials[kx] = partials[kx] + wv * rows

        acc = jnp.full((NB, HW), w_ref[2 * KH * KW], jnp.float32)    # bias
        for kx in range(KW):
            sh = partials[kx][:, kx:kx + HW]                         # (2NB, HW)
            acc = acc + mask_ref[pl.ds(kx, 1), :] * (sh[:NB] + sh[NB:])

        # Sigmoid: exp + approx reciprocal both run on the EUP slot.
        attn = pl.reciprocal(1.0 + jnp.exp(-acc), approx=True)       # (NB, HW)

        # Final multiply/store in the input dtype, lane-dense (HW lanes).
        xb = x_ref[...]                                              # (NB, C, HW)
        o_ref[...] = (xb * attn[:, None, :].astype(xb.dtype)).astype(o_ref.dtype)

    return kernel


@jax.jit
def spatial_attention(x, conv_w, conv_b):
    """x: (N, C, H, W); conv_w: (1, 2, 7, 7); conv_b: (1,). Returns (N, C, H, W)."""
    N, C, H, W = x.shape
    HW = H * W
    OFF = _round_up(3 * W + PAD, _LANES)              # lane-aligned interior start
    L = _round_up(OFF + HW + 3 * W + PAD, _LANES)     # flat padded plane length

    # Fold 1/C into the avg-channel weights (kernel accumulates a channel SUM).
    w_scaled = conv_w.astype(jnp.float32) * jnp.array(
        [1.0 / C, 1.0], jnp.float32).reshape(1, 2, 1, 1)
    w_flat = jnp.concatenate(
        [w_scaled.reshape(-1), conv_b.reshape(-1).astype(jnp.float32)])   # (99,)

    # 0/1 column-validity masks (one per kx tap) = horizontal zero padding.
    col = jnp.arange(HW, dtype=jnp.int32) % W                             # (HW,)
    dx = jnp.arange(KW, dtype=jnp.int32)[:, None] - PAD                   # (7, 1)
    colmask = ((col[None, :] + dx >= 0) &
               (col[None, :] + dx < W)).astype(jnp.float32)               # (7, HW)

    x_flat = x.reshape(N, C, HW)          # free reshape -> lane-dense blocks

    # Generation-aware VMEM budget (v7x: 64 MiB, v5e/v6e: 128 MiB physical).
    try:
        vmem_cap = int(pltpu.get_tpu_info().vmem_capacity_bytes)
    except Exception:
        vmem_cap = 64 << 20
    budget = int(vmem_cap * 0.78)

    elt = jnp.dtype(x.dtype).itemsize

    def footprint(nb):
        return (4 * nb * C * HW * elt                  # double-buffered in + out
                + 2 * KW * HW * 4                      # column masks (double buf)
                + 2 * nb * L * 4                       # padded sum/max planes
                + KW * 2 * nb * (HW + KW - 1) * 4      # conv partials (spill worst case)
                + (2 << 20))                           # compiler headroom

    # Batch-tile NB images per grid step so conv vregs use 2*NB of 8 sublanes.
    NB = 1
    for cand in (4, 2, 1):
        if N % cand == 0 and footprint(cand) <= budget:
            NB = cand
            break
    assert footprint(NB) <= budget, (
        "single-(C,H*W)-block footprint exceeds the VMEM budget; needs C- or "
        "H-band tiling")
    # TODO(synk): for v7x (2 TCs) add an H-band "parallel" grid axis (3-row halo
    # only on the tiny sum/max planes) so N=1 / small-N inference uses both cores.

    out = pl.pallas_call(
        _make_spatial_attn_kernel(NB, C, H, W, OFF, L),
        out_shape=jax.ShapeDtypeStruct((N, C, HW), x.dtype),
        grid_spec=pltpu.PrefetchScalarGridSpec(
            num_scalar_prefetch=1,                       # w_flat -> SMEM
            grid=(N // NB,),
            in_specs=[
                pl.BlockSpec((NB, C, HW), lambda n, w: (n, 0, 0)),
                # Constant block index -> Pallas elides the re-fetch after step 0.
                pl.BlockSpec((KW, HW), lambda n, w: (0, 0)),
            ],
            out_specs=pl.BlockSpec((NB, C, HW), lambda n, w: (n, 0, 0)),
            scratch_shapes=[pltpu.VMEM((2 * NB, L), jnp.float32)],
        ),
        compiler_params=pltpu.CompilerParams(
            dimension_semantics=("parallel",),
            vmem_limit_bytes=budget,
        ),
    )(w_flat, x_flat, colmask)
    return out.reshape(N, C, H, W)


def reference_forward(x, conv_w, conv_b):
    """Pure-JAX reference identical to the PyTorch SpatialAttentionModule."""
    avg = jnp.mean(x, axis=1, keepdims=True)
    mx = jnp.max(x, axis=1, keepdims=True)
    cat = jnp.concatenate([avg, mx], axis=1)                 # (N, 2, H, W)
    conv = jax.lax.conv_general_dilated(
        cat, conv_w, window_strides=(1, 1),
        padding=((PAD, PAD), (PAD, PAD)),
        dimension_numbers=("NCHW", "OIHW", "NCHW"),
    ) + conv_b.reshape(1, 1, 1, 1)
    return jax.nn.sigmoid(conv) * x


if __name__ == "__main__":
    key = jax.random.PRNGKey(0)
    k_x, k_w, k_b = jax.random.split(key, 3)

    N, C, H, W = 2, 4, 16, 16
    x = jax.random.normal(k_x, (N, C, H, W), dtype=jnp.float32)

    # Deterministic init matching nn.Conv2d(2, 1, 7) default scale:
    # kaiming_uniform_(a=sqrt(5)) -> U(-1/sqrt(fan_in), 1/sqrt(fan_in)).
    fan_in = 2 * KH * KW
    bound = 1.0 / jnp.sqrt(jnp.float32(fan_in))
    conv_w = jax.random.uniform(k_w, (1, 2, KH, KW), jnp.float32, -bound, bound)
    conv_b = jax.random.uniform(k_b, (1,), jnp.float32, -bound, bound)

    out = spatial_attention(x, conv_w, conv_b)
    out = jax.block_until_ready(out)

    ref = reference_forward(x, conv_w, conv_b)
    assert out.shape == (N, C, H, W), out.shape
    # Tolerance covers the approx (EUP) reciprocal in the sigmoid (~2e-4 rel).
    assert jnp.allclose(out, ref, atol=3e-3, rtol=3e-3), (
        float(jnp.max(jnp.abs(out - ref))))

    print("KERNEL_OK")
</pallas_src>

<mosaic_0001>
module attributes {stable_mosaic.version = 11 : i64} {
  func.func @kernel(%arg0: i32, %arg1: memref<99xf32, #tpu.memory_space<smem>>, %arg2: memref<2x4x256xf32, #tpu.memory_space<vmem>>, %arg3: memref<7x256xf32, #tpu.memory_space<vmem>>, %arg4: memref<2x4x256xf32, #tpu.memory_space<vmem>>, %arg5: memref<4x512xf32, #tpu.memory_space<vmem>>) attributes {dimension_semantics = [#tpu.dimension_semantics<parallel>], iteration_bounds = array<i64: 1>, scalar_prefetch = 1 : i64, scratch_operands = 1 : i64, tpu.core_type = #tpu.core_type<tc>, window_params = [{transform_indices = @transform_0, window_bounds = array<i64: 2, 4, 256>}, {pipeline_mode = #tpu.pipeline_mode<synchronous>, transform_indices = @transform_1, window_bounds = array<i64: 7, 256>}, {transform_indices = @transform_2, window_bounds = array<i64: 2, 4, 256>}]} {
    %cst = arith.constant 0.000000e+00 : f32
    %0 = vector.broadcast %cst : f32 to vector<2x256xf32>
    %cst_0 = arith.constant 0xFF800000 : f32
    %1 = vector.broadcast %cst_0 : f32 to vector<2x256xf32>
    %c0 = arith.constant 0 : index
    %c0_1 = arith.constant 0 : index
    %c0_2 = arith.constant 0 : index
    %2 = vector.load %arg2[%c0, %c0_1, %c0_2] : memref<2x4x256xf32, #tpu.memory_space<vmem>>, vector<2x4x256xf32>
    %cst_3 = arith.constant dense<0.000000e+00> : vector<2x256xf32>
    %3 = vector.multi_reduction <add>, %2, %cst_3 [1] : vector<2x4x256xf32> to vector<2x256xf32>
    %4 = arith.addf %0, %3 : vector<2x256xf32>
    %cst_4 = arith.constant dense<0xFF800000> : vector<2x256xf32>
    %5 = vector.multi_reduction <maximumf>, %2, %cst_4 [1] : vector<2x4x256xf32> to vector<2x256xf32>
    %6 = arith.maximumf %1, %5 : vector<2x256xf32>
    %cst_5 = arith.constant 0.000000e+00 : f32
    %7 = vector.broadcast %cst_5 : f32 to vector<4x128xf32>
    %c0_6 = arith.constant 0 : index
    %c0_7 = arith.constant 0 : index
    %8 = vector.load %arg5[%c0_6, %c0_7] : memref<4x512xf32, #tpu.memory_space<vmem>>, vector<4x128xf32>
    tpu.vector_store %arg5[%c0_6, %c0_7], %7 {strides = array<i32>} : memref<4x512xf32, #tpu.memory_space<vmem>>, vector<4x128xf32>,
    %cst_8 = arith.constant 0.000000e+00 : f32
    %9 = vector.broadcast %cst_8 : f32 to vector<4x128xf32>
    %c0_9 = arith.constant 0 : index
    %c384 = arith.constant 384 : index
    %10 = vector.load %arg5[%c0_9, %c384] : memref<4x512xf32, #tpu.memory_space<vmem>>, vector<4x128xf32>
    tpu.vector_store %arg5[%c0_9, %c384], %9 {strides = array<i32>} : memref<4x512xf32, #tpu.memory_space<vmem>>, vector<4x128xf32>,
    %11 = tpu.concatenate %4, %6 in 0 : vector<2x256xf32>, vector<2x256xf32> -> vector<4x256xf32>
    %c0_10 = arith.constant 0 : index
    %c128 = arith.constant 128 : index
    %12 = vector.load %arg5[%c0_10, %c128] : memref<4x512xf32, #tpu.memory_space<vmem>>, vector<4x256xf32>
    tpu.vector_store %arg5[%c0_10, %c128], %11 {strides = array<i32>} : memref<4x512xf32, #tpu.memory_space<vmem>>, vector<4x256xf32>,
    %cst_11 = arith.constant 0.000000e+00 : f32
    %13 = vector.broadcast %cst_11 : f32 to vector<4x262xf32>
    %cst_12 = arith.constant 0.000000e+00 : f32
    %14 = vector.broadcast %cst_12 : f32 to vector<4x262xf32>
    %cst_13 = arith.constant 0.000000e+00 : f32
    %15 = vector.broadcast %cst_13 : f32 to vector<4x262xf32>
    %cst_14 = arith.constant 0.000000e+00 : f32
    %16 = vector.broadcast %cst_14 : f32 to vector<4x262xf32>
    %cst_15 = arith.constant 0.000000e+00 : f32
    %17 = vector.broadcast %cst_15 : f32 to vector<4x262xf32>
    %cst_16 = arith.constant 0.000000e+00 : f32
    %18 = vector.broadcast %cst_16 : f32 to vector<4x262xf32>
    %cst_17 = arith.constant 0.000000e+00 : f32
    %19 = vector.broadcast %cst_17 : f32 to vector<4x262xf32>
    %c0_18 = arith.constant 0 : index
    %c77 = arith.constant 77 : index
    %20 = vector.load %arg5[%c0_18, %c77] : memref<4x512xf32, #tpu.memory_space<vmem>>, vector<4x262xf32>
    %c0_19 = arith.constant 0 : index
    %21 = memref.load %arg1[%c0_19] : memref<99xf32, #tpu.memory_space<smem>>
    %22 = vector.broadcast %21 : f32 to vector<2x1xf32>
    %c49 = arith.constant 49 : index
    %23 = memref.load %arg1[%c49] : memref<99xf32, #tpu.memory_space<smem>>
    %24 = vector.broadcast %23 : f32 to vector<2x1xf32>
    %25 = tpu.concatenate %22, %24 in 0 : vector<2x1xf32>, vector<2x1xf32> -> vector<4x1xf32>
    %26 = vector.broadcast %25 : vector<4x1xf32> to vector<4x262xf32>
    %27 = arith.mulf %26, %20 : vector<4x262xf32>
    %28 = arith.addf %13, %27 : vector<4x262xf32>
    %c1 = arith.constant 1 : index
    %29 = memref.load %arg1[%c1] : memref<99xf32, #tpu.memory_space<smem>>
    %30 = vector.broadcast %29 : f32 to vector<2x1xf32>
    %c50 = arith.constant 50 : index
    %31 = memref.load %arg1[%c50] : memref<99xf32, #tpu.memory_space<smem>>
    %32 = vector.broadcast %31 : f32 to vector<2x1xf32>
    %33 = tpu.concatenate %30, %32 in 0 : vector<2x1xf32>, vector<2x1xf32> -> vector<4x1xf32>
    %34 = vector.broadcast %33 : vector<4x1xf32> to vector<4x262xf32>
    %35 = arith.mulf %34, %20 : vector<4x262xf32>
    %36 = arith.addf %14, %35 : vector<4x262xf32>
    %c2 = arith.constant 2 : index
    %37 = memref.load %arg1[%c2] : memref<99xf32, #tpu.memory_space<smem>>
    %38 = vector.broadcast %37 : f32 to vector<2x1xf32>
    %c51 = arith.constant 51 : index
    %39 = memref.load %arg1[%c51] : memref<99xf32, #tpu.memory_space<smem>>
    %40 = vector.broadcast %39 : f32 to vector<2x1xf32>
    %41 = tpu.concatenate %38, %40 in 0 : vector<2x1xf32>, vector<2x1xf32> -> vector<4x1xf32>
    %42 = vector.broadcast %41 : vector<4x1xf32> to vector<4x262xf32>
    %43 = arith.mulf %42, %20 : vector<4x262xf32>
    %44 = arith.addf %15, %43 : vector<4x262xf32>
    %c3 = arith.constant 3 : index
    %45 = memref.load %arg1[%c3] : memref<99xf32, #tpu.memory_space<smem>>
    %46 = vector.broadcast %45 : f32 to vector<2x1xf32>
    %c52 = arith.constant 52 : index
    %47 = memref.load %arg1[%c52] : memref<99xf32, #tpu.memory_space<smem>>
    %48 = vector.broadcast %47 : f32 to vector<2x1xf32>
    %49 = tpu.concatenate %46, %48 in 0 : vector<2x1xf32>, vector<2x1xf32> -> vector<4x1xf32>
    %50 = vector.broadcast %49 : vector<4x1xf32> to vector<4x262xf32>
    %51 = arith.mulf %50, %20 : vector<4x262xf32>
    %52 = arith.addf %16, %51 : vector<4x262xf32>
    %c4 = arith.constant 4 : index
    %53 = memref.load %arg1[%c4] : memref<99xf32, #tpu.memory_space<smem>>
    %54 = vector.broadcast %53 : f32 to vector<2x1xf32>
    %c53 = arith.constant 53 : index
    %55 = memref.load %arg1[%c53] : memref<99xf32, #tpu.memory_space<smem>>
    %56 = vector.broadcast %55 : f32 to vector<2x1xf32>
    %57 = tpu.concatenate %54, %56 in 0 : vector<2x1xf32>, vector<2x1xf32> -> vector<4x1xf32>
    %58 = vector.broadcast %57 : vector<4x1xf32> to vector<4x262xf32>
    %59 = arith.mulf %58, %20 : vector<4x262xf32>
    %60 = arith.addf %17, %59 : vector<4x262xf32>
    %c5 = arith.constant 5 : index
    %61 = memref.load %arg1[%c5] : memref<99xf32, #tpu.memory_space<smem>>
    %62 = vector.broadcast %61 : f32 to vector<2x1xf32>
    %c54 = arith.constant 54 : index
    %63 = memref.load %arg1[%c54] : memref<99xf32, #tpu.memory_space<smem>>
    %64 = vector.broadcast %63 : f32 to vector<2x1xf32>
    %65 = tpu.concatenate %62, %64 in 0 : vector<2x1xf32>, vector<2x1xf32> -> vector<4x1xf32>
    %66 = vector.broadcast %65 : vector<4x1xf32> to vector<4x262xf32>
    %67 = arith.mulf %66, %20 : vector<4x262xf32>
    %68 = arith.addf %18, %67 : vector<4x262xf32>
    %c6 = arith.constant 6 : index
    %69 = memref.load %arg1[%c6] : memref<99xf32, #tpu.memory_space<smem>>
    %70 = vector.broadcast %69 : f32 to vector<2x1xf32>
    %c55 = arith.constant 55 : index
    %71 = memref.load %arg1[%c55] : memref<99xf32, #tpu.memory_space<smem>>
    %72 = vector.broadcast %71 : f32 to vector<2x1xf32>
    %73 = tpu.concatenate %70, %72 in 0 : vector<2x1xf32>, vector<2x1xf32> -> vector<4x1xf32>
    %74 = vector.broadcast %73 : vector<4x1xf32> to vector<4x262xf32>
    %75 = arith.mulf %74, %20 : vector<4x262xf32>
    %76 = arith.addf %19, %75 : vector<4x262xf32>
    %c0_20 = arith.constant 0 : index
    %c93 = arith.constant 93 : index
    %77 = vector.load %arg5[%c0_20, %c93] : memref<4x512xf32, #tpu.memory_space<vmem>>, vector<4x262xf32>
    %c7 = arith.constant 7 : index
    %78 = memref.load %arg1[%c7] : memref<99xf32, #tpu.memory_space<smem>>
    %79 = vector.broadcast %78 : f32 to vector<2x1xf32>
    %c56 = arith.constant 56 : index
    %80 = memref.load %arg1[%c56] : memref<99xf32, #tpu.memory_space<smem>>
    %81 = vector.broadcast %80 : f32 to vector<2x1xf32>
    %82 = tpu.concatenate %79, %81 in 0 : vector<2x1xf32>, vector<2x1xf32> -> vector<4x1xf32>
    %83 = vector.broadcast %82 : vector<4x1xf32> to vector<4x262xf32>
    %84 = arith.mulf %83, %77 : vector<4x262xf32>
    %85 = arith.addf %28, %84 : vector<4x262xf32>
    %c8 = arith.constant 8 : index
    %86 = memref.load %arg1[%c8] : memref<99xf32, #tpu.memory_space<smem>>
    %87 = vector.broadcast %86 : f32 to vector<2x1xf32>
    %c57 = arith.constant 57 : index
    %88 = memref.load %arg1[%c57] : memref<99xf32, #tpu.memory_space<smem>>
    %89 = vector.broadcast %88 : f32 to vector<2x1xf32>
    %90 = tpu.concatenate %87, %89 in 0 : vector<2x1xf32>, vector<2x1xf32> -> vector<4x1xf32>
    %91 = vector.broadcast %90 : vector<4x1xf32> to vector<4x262xf32>
    %92 = arith.mulf %91, %77 : vector<4x262xf32>
    %93 = arith.addf %36, %92 : vector<4x262xf32>
    %c9 = arith.constant 9 : index
    %94 = memref.load %arg1[%c9] : memref<99xf32, #tpu.memory_space<smem>>
    %95 = vector.broadcast %94 : f32 to vector<2x1xf32>
    %c58 = arith.constant 58 : index
    %96 = memref.load %arg1[%c58] : memref<99xf32, #tpu.memory_space<smem>>
    %97 = vector.broadcast %96 : f32 to vector<2x1xf32>
    %98 = tpu.concatenate %95, %97 in 0 : vector<2x1xf32>, vector<2x1xf32> -> vector<4x1xf32>
    %99 = vector.broadcast %98 : vector<4x1xf32> to vector<4x262xf32>
    %100 = arith.mulf %99, %77 : vector<4x262xf32>
    %101 = arith.addf %44, %100 : vector<4x262xf32>
    %c10 = arith.constant 10 : index
    %102 = memref.load %arg1[%c10] : memref<99xf32, #tpu.memory_space<smem>>
    %103 = vector.broadcast %102 : f32 to vector<2x1xf32>
    %c59 = arith.constant 59 : index
    %104 = memref.load %arg1[%c59] : memref<99xf32, #tpu.memory_space<smem>>
    %105 = vector.broadcast %104 : f32 to vector<2x1xf32>
    %106 = tpu.concatenate %103, %105 in 0 : vector<2x1xf32>, vector<2x1xf32> -> vector<4x1xf32>
    %107 = vector.broadcast %106 : vector<4x1xf32> to vector<4x262xf32>
    %108 = arith.mulf %107, %77 : vector<4x262xf32>
    %109 = arith.addf %52, %108 : vector<4x262xf32>
    %c11 = arith.constant 11 : index
    %110 = memref.load %arg1[%c11] : memref<99xf32, #tpu.memory_space<smem>>
    %111 = vector.broadcast %110 : f32 to vector<2x1xf32>
    %c60 = arith.constant 60 : index
    %112 = memref.load %arg1[%c60] : memref<99xf32, #tpu.memory_space<smem>>
    %113 = vector.broadcast %112 : f32 to vector<2x1xf32>
    %114 = tpu.concatenate %111, %113 in 0 : vector<2x1xf32>, vector<2x1xf32> -> vector<4x1xf32>
    %115 = vector.broadcast %114 : vector<4x1xf32> to vector<4x262xf32>
    %116 = arith.mulf %115, %77 : vector<4x262xf32>
    %117 = arith.addf %60, %116 : vector<4x262xf32>
    %c12 = arith.constant 12 : index
    %118 = memref.load %arg1[%c12] : memref<99xf32, #tpu.memory_space<smem>>
    %119 = vector.broadcast %118 : f32 to vector<2x1xf32>
    %c61 = arith.constant 61 : index
    %120 = memref.load %arg1[%c61] : memref<99xf32, #tpu.memory_space<smem>>
    %121 = vector.broadcast %120 : f32 to vector<2x1xf32>
    %122 = tpu.concatenate %119, %121 in 0 : vector<2x1xf32>, vector<2x1xf32> -> vector<4x1xf32>
    %123 = vector.broadcast %122 : vector<4x1xf32> to vector<4x262xf32>
    %124 = arith.mulf %123, %77 : vector<4x262xf32>
    %125 = arith.addf %68, %124 : vector<4x262xf32>
    %c13 = arith.constant 13 : index
    %126 = memref.load %arg1[%c13] : memref<99xf32, #tpu.memory_space<smem>>
    %127 = vector.broadcast %126 : f32 to vector<2x1xf32>
    %c62 = arith.constant 62 : index
    %128 = memref.load %arg1[%c62] : memref<99xf32, #tpu.memory_space<smem>>
    %129 = vector.broadcast %128 : f32 to vector<2x1xf32>
    %130 = tpu.concatenate %127, %129 in 0 : vector<2x1xf32>, vector<2x1xf32> -> vector<4x1xf32>
    %131 = vector.broadcast %130 : vector<4x1xf32> to vector<4x262xf32>
    %132 = arith.mulf %131, %77 : vector<4x262xf32>
    %133 = arith.addf %76, %132 : vector<4x262xf32>
    %c0_21 = arith.constant 0 : index
    %c109 = arith.constant 109 : index
    %134 = vector.load %arg5[%c0_21, %c109] : memref<4x512xf32, #tpu.memory_space<vmem>>, vector<4x262xf32>
    %c14 = arith.constant 14 : index
    %135 = memref.load %arg1[%c14] : memref<99xf32, #tpu.memory_space<smem>>
    %136 = vector.broadcast %135 : f32 to vector<2x1xf32>
    %c63 = arith.constant 63 : index
    %137 = memref.load %arg1[%c63] : memref<99xf32, #tpu.memory_space<smem>>
    %138 = vector.broadcast %137 : f32 to vector<2x1xf32>
    %139 = tpu.concatenate %136, %138 in 0 : vector<2x1xf32>, vector<2x1xf32> -> vector<4x1xf32>
    %140 = vector.broadcast %139 : vector<4x1xf32> to vector<4x262xf32>
    %141 = arith.mulf %140, %134 : vector<4x262xf32>
    %142 = arith.addf %85, %141 : vector<4x262xf32>
    %c15 = arith.constant 15 : index
    %143 = memref.load %arg1[%c15] : memref<99xf32, #tpu.memory_space<smem>>
    %144 = vector.broadcast %143 : f32 to vector<2x1xf32>
    %c64 = arith.constant 64 : index
    %145 = memref.load %arg1[%c64] : memref<99xf32, #tpu.memory_space<smem>>
    %146 = vector.broadcast %145 : f32 to vector<2x1xf32>
    %147 = tpu.concatenate %144, %146 in 0 : vector<2x1xf32>, vector<2x1xf32> -> vector<4x1xf32>
    %148 = vector.broadcast %147 : vector<4x1xf32> to vector<4x262xf32>
    %149 = arith.mulf %148, %134 : vector<4x262xf32>
    %150 = arith.addf %93, %149 : vector<4x262xf32>
    %c16 = arith.constant 16 : index
    %151 = memref.load %arg1[%c16] : memref<99xf32, #tpu.memory_space<smem>>
    %152 = vector.broadcast %151 : f32 to vector<2x1xf32>
    %c65 = arith.constant 65 : index
    %153 = memref.load %arg1[%c65] : memref<99xf32, #tpu.memory_space<smem>>
    %154 = vector.broadcast %153 : f32 to vector<2x1xf32>
    %155 = tpu.concatenate %152, %154 in 0 : vector<2x1xf32>, vector<2x1xf32> -> vector<4x1xf32>
    %156 = vector.broadcast %155 : vector<4x1xf32> to vector<4x262xf32>
    %157 = arith.mulf %156, %134 : vector<4x262xf32>
    %158 = arith.addf %101, %157 : vector<4x262xf32>
    %c17 = arith.constant 17 : index
    %159 = memref.load %arg1[%c17] : memref<99xf32, #tpu.memory_space<smem>>
    %160 = vector.broadcast %159 : f32 to vector<2x1xf32>
    %c66 = arith.constant 66 : index
    %161 = memref.load %arg1[%c66] : memref<99xf32, #tpu.memory_space<smem>>
    %162 = vector.broadcast %161 : f32 to vector<2x1xf32>
    %163 = tpu.concatenate %160, %162 in 0 : vector<2x1xf32>, vector<2x1xf32> -> vector<4x1xf32>
    %164 = vector.broadcast %163 : vector<4x1xf32> to vector<4x262xf32>
    %165 = arith.mulf %164, %134 : vector<4x262xf32>
    %166 = arith.addf %109, %165 : vector<4x262xf32>
    %c18 = arith.constant 18 : index
    %167 = memref.load %arg1[%c18] : memref<99xf32, #tpu.memory_space<smem>>
    %168 = vector.broadcast %167 : f32 to vector<2x1xf32>
    %c67 = arith.constant 67 : index
    %169 = memref.load %arg1[%c67] : memref<99xf32, #tpu.memory_space<smem>>
    %170 = vector.broadcast %169 : f32 to vector<2x1xf32>
    %171 = tpu.concatenate %168, %170 in 0 : vector<2x1xf32>, vector<2x1xf32> -> vector<4x1xf32>
    %172 = vector.broadcast %171 : vector<4x1xf32> to vector<4x262xf32>
    %173 = arith.mulf %172, %134 : vector<4x262xf32>
    %174 = arith.addf %117, %173 : vector<4x262xf32>
    %c19 = arith.constant 19 : index
    %175 = memref.load %arg1[%c19] : memref<99xf32, #tpu.memory_space<smem>>
    %176 = vector.broadcast %175 : f32 to vector<2x1xf32>
    %c68 = arith.constant 68 : index
    %177 = memref.load %arg1[%c68] : memref<99xf32, #tpu.memory_space<smem>>
    %178 = vector.broadcast %177 : f32 to vector<2x1xf32>
    %179 = tpu.concatenate %176, %178 in 0 : vector<2x1xf32>, vector<2x1xf32> -> vector<4x1xf32>
    %180 = vector.broadcast %179 : vector<4x1xf32> to vector<4x262xf32>
    %181 = arith.mulf %180, %134 : vector<4x262xf32>
    %182 = arith.addf %125, %181 : vector<4x262xf32>
    %c20 = arith.constant 20 : index
    %183 = memref.load %arg1[%c20] : memref<99xf32, #tpu.memory_space<smem>>
    %184 = vector.broadcast %183 : f32 to vector<2x1xf32>
    %c69 = arith.constant 69 : index
    %185 = memref.load %arg1[%c69] : memref<99xf32, #tpu.memory_space<smem>>
    %186 = vector.broadcast %185 : f32 to vector<2x1xf32>
    %187 = tpu.concatenate %184, %186 in 0 : vector<2x1xf32>, vector<2x1xf32> -> vector<4x1xf32>
    %188 = vector.broadcast %187 : vector<4x1xf32> to vector<4x262xf32>
    %189 = arith.mulf %188, %134 : vector<4x262xf32>
    %190 = arith.addf %133, %189 : vector<4x262xf32>
    %c0_22 = arith.constant 0 : index
    %c125 = arith.constant 125 : index
    %191 = vector.load %arg5[%c0_22, %c125] : memref<4x512xf32, #tpu.memory_space<vmem>>, vector<4x262xf32>
    %c21 = arith.constant 21 : index
    %192 = memref.load %arg1[%c21] : memref<99xf32, #tpu.memory_space<smem>>
    %193 = vector.broadcast %192 : f32 to vector<2x1xf32>
    %c70 = arith.constant 70 : index
    %194 = memref.load %arg1[%c70] : memref<99xf32, #tpu.memory_space<smem>>
    %195 = vector.broadcast %194 : f32 to vector<2x1xf32>
    %196 = tpu.concatenate %193, %195 in 0 : vector<2x1xf32>, vector<2x1xf32> -> vector<4x1xf32>
    %197 = vector.broadcast %196 : vector<4x1xf32> to vector<4x262xf32>
    %198 = arith.mulf %197, %191 : vector<4x262xf32>
    %199 = arith.addf %142, %198 : vector<4x262xf32>
    %c22 = arith.constant 22 : index
    %200 = memref.load %arg1[%c22] : memref<99xf32, #tpu.memory_space<smem>>
    %201 = vector.broadcast %200 : f32 to vector<2x1xf32>
    %c71 = arith.constant 71 : index
    %202 = memref.load %arg1[%c71] : memref<99xf32, #tpu.memory_space<smem>>
    %203 = vector.broadcast %202 : f32 to vector<2x1xf32>
    %204 = tpu.concatenate %201, %203 in 0 : vector<2x1xf32>, vector<2x1xf32> -> vector<4x1xf32>
    %205 = vector.broadcast %204 : vector<4x1xf32> to vector<4x262xf32>
    %206 = arith.mulf %205, %191 : vector<4x262xf32>
    %207 = arith.addf %150, %206 : vector<4x262xf32>
    %c23 = arith.constant 23 : index
    %208 = memref.load %arg1[%c23] : memref<99xf32, #tpu.memory_space<smem>>
    %209 = vector.broadcast %208 : f32 to vector<2x1xf32>
    %c72 = arith.constant 72 : index
    %210 = memref.load %arg1[%c72] : memref<99xf32, #tpu.memory_space<smem>>
    %211 = vector.broadcast %210 : f32 to vector<2x1xf32>
    %212 = tpu.concatenate %209, %211 in 0 : vector<2x1xf32>, vector<2x1xf32> -> vector<4x1xf32>
    %213 = vector.broadcast %212 : vector<4x1xf32> to vector<4x262xf32>
    %214 = arith.mulf %213, %191 : vector<4x262xf32>
    %215 = arith.addf %158, %214 : vector<4x262xf32>
    %c24 = arith.constant 24 : index
    %216 = memref.load %arg1[%c24] : memref<99xf32, #tpu.memory_space<smem>>
    %217 = vector.broadcast %216 : f32 to vector<2x1xf32>
    %c73 = arith.constant 73 : index
    %218 = memref.load %arg1[%c73] : memref<99xf32, #tpu.memory_space<smem>>
    %219 = vector.broadcast %218 : f32 to vector<2x1xf32>
    %220 = tpu.concatenate %217, %219 in 0 : vector<2x1xf32>, vector<2x1xf32> -> vector<4x1xf32>
    %221 = vector.broadcast %220 : vector<4x1xf32> to vector<4x262xf32>
    %222 = arith.mulf %221, %191 : vector<4x262xf32>
    %223 = arith.addf %166, %222 : vector<4x262xf32>
    %c25 = arith.constant 25 : index
    %224 = memref.load %arg1[%c25] : memref<99xf32, #tpu.memory_space<smem>>
    %225 = vector.broadcast %224 : f32 to vector<2x1xf32>
    %c74 = arith.constant 74 : index
    %226 = memref.load %arg1[%c74] : memref<99xf32, #tpu.memory_space<smem>>
    %227 = vector.broadcast %226 : f32 to vector<2x1xf32>
    %228 = tpu.concatenate %225, %227 in 0 : vector<2x1xf32>, vector<2x1xf32> -> vector<4x1xf32>
    %229 = vector.broadcast %228 : vector<4x1xf32> to vector<4x262xf32>
    %230 = arith.mulf %229, %191 : vector<4x262xf32>
    %231 = arith.addf %174, %230 : vector<4x262xf32>
    %c26 = arith.constant 26 : index
    %232 = memref.load %arg1[%c26] : memref<99xf32, #tpu.memory_space<smem>>
    %233 = vector.broadcast %232 : f32 to vector<2x1xf32>
    %c75 = arith.constant 75 : index
    %234 = memref.load %arg1[%c75] : memref<99xf32, #tpu.memory_space<smem>>
    %235 = vector.broadcast %234 : f32 to vector<2x1xf32>
    %236 = tpu.concatenate %233, %235 in 0 : vector<2x1xf32>, vector<2x1xf32> -> vector<4x1xf32>
    %237 = vector.broadcast %236 : vector<4x1xf32> to vector<4x262xf32>
    %238 = arith.mulf %237, %191 : vector<4x262xf32>
    %239 = arith.addf %182, %238 : vector<4x262xf32>
    %c27 = arith.constant 27 : index
    %240 = memref.load %arg1[%c27] : memref<99xf32, #tpu.memory_space<smem>>
    %241 = vector.broadcast %240 : f32 to vector<2x1xf32>
    %c76 = arith.constant 76 : index
    %242 = memref.load %arg1[%c76] : memref<99xf32, #tpu.memory_space<smem>>
    %243 = vector.broadcast %242 : f32 to vector<2x1xf32>
    %244 = tpu.concatenate %241, %243 in 0 : vector<2x1xf32>, vector<2x1xf32> -> vector<4x1xf32>
    %245 = vector.broadcast %244 : vector<4x1xf32> to vector<4x262xf32>
    %246 = arith.mulf %245, %191 : vector<4x262xf32>
    %247 = arith.addf %190, %246 : vector<4x262xf32>
    %c0_23 = arith.constant 0 : index
    %c141 = arith.constant 141 : index
    %248 = vector.load %arg5[%c0_23, %c141] : memref<4x512xf32, #tpu.memory_space<vmem>>, vector<4x262xf32>
    %c28 = arith.constant 28 : index
    %249 = memref.load %arg1[%c28] : memref<99xf32, #tpu.memory_space<smem>>
    %250 = vector.broadcast %249 : f32 to vector<2x1xf32>
    %c77_24 = arith.constant 77 : index
    %251 = memref.load %arg1[%c77_24] : memref<99xf32, #tpu.memory_space<smem>>
    %252 = vector.broadcast %251 : f32 to vector<2x1xf32>
    %253 = tpu.concatenate %250, %252 in 0 : vector<2x1xf32>, vector<2x1xf32> -> vector<4x1xf32>
    %254 = vector.broadcast %253 : vector<4x1xf32> to vector<4x262xf32>
    %255 = arith.mulf %254, %248 : vector<4x262xf32>
    %256 = arith.addf %199, %255 : vector<4x262xf32>
    %c29 = arith.constant 29 : index
    %257 = memref.load %arg1[%c29] : memref<99xf32, #tpu.memory_space<smem>>
    %258 = vector.broadcast %257 : f32 to vector<2x1xf32>
    %c78 = arith.constant 78 : index
    %259 = memref.load %arg1[%c78] : memref<99xf32, #tpu.memory_space<smem>>
    %260 = vector.broadcast %259 : f32 to vector<2x1xf32>
    %261 = tpu.concatenate %258, %260 in 0 : vector<2x1xf32>, vector<2x1xf32> -> vector<4x1xf32>
    %262 = vector.broadcast %261 : vector<4x1xf32> to vector<4x262xf32>
    %263 = arith.mulf %262, %248 : vector<4x262xf32>
    %264 = arith.addf %207, %263 : vector<4x262xf32>
    %c30 = arith.constant 30 : index
    %265 = memref.load %arg1[%c30] : memref<99xf32, #tpu.memory_space<smem>>
    %266 = vector.broadcast %265 : f32 to vector<2x1xf32>
    %c79 = arith.constant 79 : index
    %267 = memref.load %arg1[%c79] : memref<99xf32, #tpu.memory_space<smem>>
    %268 = vector.broadcast %267 : f32 to vector<2x1xf32>
    %269 = tpu.concatenate %266, %268 in 0 : vector<2x1xf32>, vector<2x1xf32> -> vector<4x1xf32>
    %270 = vector.broadcast %269 : vector<4x1xf32> to vector<4x262xf32>
    %271 = arith.mulf %270, %248 : vector<4x262xf32>
    %272 = arith.addf %215, %271 : vector<4x262xf32>
    %c31 = arith.constant 31 : index
    %273 = memref.load %arg1[%c31] : memref<99xf32, #tpu.memory_space<smem>>
    %274 = vector.broadcast %273 : f32 to vector<2x1xf32>
    %c80 = arith.constant 80 : index
    %275 = memref.load %arg1[%c80] : memref<99xf32, #tpu.memory_space<smem>>
    %276 = vector.broadcast %275 : f32 to vector<2x1xf32>
    %277 = tpu.concatenate %274, %276 in 0 : vector<2x1xf32>, vector<2x1xf32> -> vector<4x1xf32>
    %278 = vector.broadcast %277 : vector<4x1xf32> to vector<4x262xf32>
    %279 = arith.mulf %278, %248 : vector<4x262xf32>
    %280 = arith.addf %223, %279 : vector<4x262xf32>
    %c32 = arith.constant 32 : index
    %281 = memref.load %arg1[%c32] : memref<99xf32, #tpu.memory_space<smem>>
    %282 = vector.broadcast %281 : f32 to vector<2x1xf32>
    %c81 = arith.constant 81 : index
    %283 = memref.load %arg1[%c81] : memref<99xf32, #tpu.memory_space<smem>>
    %284 = vector.broadcast %283 : f32 to vector<2x1xf32>
    %285 = tpu.concatenate %282, %284 in 0 : vector<2x1xf32>, vector<2x1xf32> -> vector<4x1xf32>
    %286 = vector.broadcast %285 : vector<4x1xf32> to vector<4x262xf32>
    %287 = arith.mulf %286, %248 : vector<4x262xf32>
    %288 = arith.addf %231, %287 : vector<4x262xf32>
    %c33 = arith.constant 33 : index
    %289 = memref.load %arg1[%c33] : memref<99xf32, #tpu.memory_space<smem>>
    %290 = vector.broadcast %289 : f32 to vector<2x1xf32>
    %c82 = arith.constant 82 : index
    %291 = memref.load %arg1[%c82] : memref<99xf32, #tpu.memory_space<smem>>
    %292 = vector.broadcast %291 : f32 to vector<2x1xf32>
    %293 = tpu.concatenate %290, %292 in 0 : vector<2x1xf32>, vector<2x1xf32> -> vector<4x1xf32>
    %294 = vector.broadcast %293 : vector<4x1xf32> to vector<4x262xf32>
    %295 = arith.mulf %294, %248 : vector<4x262xf32>
    %296 = arith.addf %239, %295 : vector<4x262xf32>
    %c34 = arith.constant 34 : index
    %297 = memref.load %arg1[%c34] : memref<99xf32, #tpu.memory_space<smem>>
    %298 = vector.broadcast %297 : f32 to vector<2x1xf32>
    %c83 = arith.constant 83 : index
    %299 = memref.load %arg1[%c83] : memref<99xf32, #tpu.memory_space<smem>>
    %300 = vector.broadcast %299 : f32 to vector<2x1xf32>
    %301 = tpu.concatenate %298, %300 in 0 : vector<2x1xf32>, vector<2x1xf32> -> vector<4x1xf32>
    %302 = vector.broadcast %301 : vector<4x1xf32> to vector<4x262xf32>
    %303 = arith.mulf %302, %248 : vector<4x262xf32>
    %304 = arith.addf %247, %303 : vector<4x262xf32>
    %c0_25 = arith.constant 0 : index
    %c157 = arith.constant 157 : index
    %305 = vector.load %arg5[%c0_25, %c157] : memref<4x512xf32, #tpu.memory_space<vmem>>, vector<4x262xf32>
    %c35 = arith.constant 35 : index
    %306 = memref.load %arg1[%c35] : memref<99xf32, #tpu.memory_space<smem>>
    %307 = vector.broadcast %306 : f32 to vector<2x1xf32>
    %c84 = arith.constant 84 : index
    %308 = memref.load %arg1[%c84] : memref<99xf32, #tpu.memory_space<smem>>
    %309 = vector.broadcast %308 : f32 to vector<2x1xf32>
    %310 = tpu.concatenate %307, %309 in 0 : vector<2x1xf32>, vector<2x1xf32> -> vector<4x1xf32>
    %311 = vector.broadcast %310 : vector<4x1xf32> to vector<4x262xf32>
    %312 = arith.mulf %311, %305 : vector<4x262xf32>
    %313 = arith.addf %256, %312 : vector<4x262xf32>
    %c36 = arith.constant 36 : index
    %314 = memref.load %arg1[%c36] : memref<99xf32, #tpu.memory_space<smem>>
    %315 = vector.broadcast %314 : f32 to vector<2x1xf32>
    %c85 = arith.constant 85 : index
    %316 = memref.load %arg1[%c85] : memref<99xf32, #tpu.memory_space<smem>>
    %317 = vector.broadcast %316 : f32 to vector<2x1xf32>
    %318 = tpu.concatenate %315, %317 in 0 : vector<2x1xf32>, vector<2x1xf32> -> vector<4x1xf32>
    %319 = vector.broadcast %318 : vector<4x1xf32> to vector<4x262xf32>
    %320 = arith.mulf %319, %305 : vector<4x262xf32>
    %321 = arith.addf %264, %320 : vector<4x262xf32>
    %c37 = arith.constant 37 : index
    %322 = memref.load %arg1[%c37] : memref<99xf32, #tpu.memory_space<smem>>
    %323 = vector.broadcast %322 : f32 to vector<2x1xf32>
    %c86 = arith.constant 86 : index
    %324 = memref.load %arg1[%c86] : memref<99xf32, #tpu.memory_space<smem>>
    %325 = vector.broadcast %324 : f32 to vector<2x1xf32>
    %326 = tpu.concatenate %323, %325 in 0 : vector<2x1xf32>, vector<2x1xf32> -> vector<4x1xf32>
    %327 = vector.broadcast %326 : vector<4x1xf32> to vector<4x262xf32>
    %328 = arith.mulf %327, %305 : vector<4x262xf32>
    %329 = arith.addf %272, %328 : vector<4x262xf32>
    %c38 = arith.constant 38 : index
    %330 = memref.load %arg1[%c38] : memref<99xf32, #tpu.memory_space<smem>>
    %331 = vector.broadcast %330 : f32 to vector<2x1xf32>
    %c87 = arith.constant 87 : index
    %332 = memref.load %arg1[%c87] : memref<99xf32, #tpu.memory_space<smem>>
    %333 = vector.broadcast %332 : f32 to vector<2x1xf32>
    %334 = tpu.concatenate %331, %333 in 0 : vector<2x1xf32>, vector<2x1xf32> -> vector<4x1xf32>
    %335 = vector.broadcast %334 : vector<4x1xf32> to vector<4x262xf32>
    %336 = arith.mulf %335, %305 : vector<4x262xf32>
    %337 = arith.addf %280, %336 : vector<4x262xf32>
    %c39 = arith.constant 39 : index
    %338 = memref.load %arg1[%c39] : memref<99xf32, #tpu.memory_space<smem>>
    %339 = vector.broadcast %338 : f32 to vector<2x1xf32>
    %c88 = arith.constant 88 : index
    %340 = memref.load %arg1[%c88] : memref<99xf32, #tpu.memory_space<smem>>
    %341 = vector.broadcast %340 : f32 to vector<2x1xf32>
    %342 = tpu.concatenate %339, %341 in 0 : vector<2x1xf32>, vector<2x1xf32> -> vector<4x1xf32>
    %343 = vector.broadcast %342 : vector<4x1xf32> to vector<4x262xf32>
    %344 = arith.mulf %343, %305 : vector<4x262xf32>
    %345 = arith.addf %288, %344 : vector<4x262xf32>
    %c40 = arith.constant 40 : index
    %346 = memref.load %arg1[%c40] : memref<99xf32, #tpu.memory_space<smem>>
    %347 = vector.broadcast %346 : f32 to vector<2x1xf32>
    %c89 = arith.constant 89 : index
    %348 = memref.load %arg1[%c89] : memref<99xf32, #tpu.memory_space<smem>>
    %349 = vector.broadcast %348 : f32 to vector<2x1xf32>
    %350 = tpu.concatenate %347, %349 in 0 : vector<2x1xf32>, vector<2x1xf32> -> vector<4x1xf32>
    %351 = vector.broadcast %350 : vector<4x1xf32> to vector<4x262xf32>
    %352 = arith.mulf %351, %305 : vector<4x262xf32>
    %353 = arith.addf %296, %352 : vector<4x262xf32>
    %c41 = arith.constant 41 : index
    %354 = memref.load %arg1[%c41] : memref<99xf32, #tpu.memory_space<smem>>
    %355 = vector.broadcast %354 : f32 to vector<2x1xf32>
    %c90 = arith.constant 90 : index
    %356 = memref.load %arg1[%c90] : memref<99xf32, #tpu.memory_space<smem>>
    %357 = vector.broadcast %356 : f32 to vector<2x1xf32>
    %358 = tpu.concatenate %355, %357 in 0 : vector<2x1xf32>, vector<2x1xf32> -> vector<4x1xf32>
    %359 = vector.broadcast %358 : vector<4x1xf32> to vector<4x262xf32>
    %360 = arith.mulf %359, %305 : vector<4x262xf32>
    %361 = arith.addf %304, %360 : vector<4x262xf32>
    %c0_26 = arith.constant 0 : index
    %c173 = arith.constant 173 : index
    %362 = vector.load %arg5[%c0_26, %c173] : memref<4x512xf32, #tpu.memory_space<vmem>>, vector<4x262xf32>
    %c42 = arith.constant 42 : index
    %363 = memref.load %arg1[%c42] : memref<99xf32, #tpu.memory_space<smem>>
    %364 = vector.broadcast %363 : f32 to vector<2x1xf32>
    %c91 = arith.constant 91 : index
    %365 = memref.load %arg1[%c91] : memref<99xf32, #tpu.memory_space<smem>>
    %366 = vector.broadcast %365 : f32 to vector<2x1xf32>
    %367 = tpu.concatenate %364, %366 in 0 : vector<2x1xf32>, vector<2x1xf32> -> vector<4x1xf32>
    %368 = vector.broadcast %367 : vector<4x1xf32> to vector<4x262xf32>
    %369 = arith.mulf %368, %362 : vector<4x262xf32>
    %370 = arith.addf %313, %369 : vector<4x262xf32>
    %c43 = arith.constant 43 : index
    %371 = memref.load %arg1[%c43] : memref<99xf32, #tpu.memory_space<smem>>
    %372 = vector.broadcast %371 : f32 to vector<2x1xf32>
    %c92 = arith.constant 92 : index
    %373 = memref.load %arg1[%c92] : memref<99xf32, #tpu.memory_space<smem>>
    %374 = vector.broadcast %373 : f32 to vector<2x1xf32>
    %375 = tpu.concatenate %372, %374 in 0 : vector<2x1xf32>, vector<2x1xf32> -> vector<4x1xf32>
    %376 = vector.broadcast %375 : vector<4x1xf32> to vector<4x262xf32>
    %377 = arith.mulf %376, %362 : vector<4x262xf32>
    %378 = arith.addf %321, %377 : vector<4x262xf32>
    %c44 = arith.constant 44 : index
    %379 = memref.load %arg1[%c44] : memref<99xf32, #tpu.memory_space<smem>>
    %380 = vector.broadcast %379 : f32 to vector<2x1xf32>
    %c93_27 = arith.constant 93 : index
    %381 = memref.load %arg1[%c93_27] : memref<99xf32, #tpu.memory_space<smem>>
    %382 = vector.broadcast %381 : f32 to vector<2x1xf32>
    %383 = tpu.concatenate %380, %382 in 0 : vector<2x1xf32>, vector<2x1xf32> -> vector<4x1xf32>
    %384 = vector.broadcast %383 : vector<4x1xf32> to vector<4x262xf32>
    %385 = arith.mulf %384, %362 : vector<4x262xf32>
    %386 = arith.addf %329, %385 : vector<4x262xf32>
    %c45 = arith.constant 45 : index
    %387 = memref.load %arg1[%c45] : memref<99xf32, #tpu.memory_space<smem>>
    %388 = vector.broadcast %387 : f32 to vector<2x1xf32>
    %c94 = arith.constant 94 : index
    %389 = memref.load %arg1[%c94] : memref<99xf32, #tpu.memory_space<smem>>
    %390 = vector.broadcast %389 : f32 to vector<2x1xf32>
    %391 = tpu.concatenate %388, %390 in 0 : vector<2x1xf32>, vector<2x1xf32> -> vector<4x1xf32>
    %392 = vector.broadcast %391 : vector<4x1xf32> to vector<4x262xf32>
    %393 = arith.mulf %392, %362 : vector<4x262xf32>
    %394 = arith.addf %337, %393 : vector<4x262xf32>
    %c46 = arith.constant 46 : index
    %395 = memref.load %arg1[%c46] : memref<99xf32, #tpu.memory_space<smem>>
    %396 = vector.broadcast %395 : f32 to vector<2x1xf32>
    %c95 = arith.constant 95 : index
    %397 = memref.load %arg1[%c95] : memref<99xf32, #tpu.memory_space<smem>>
    %398 = vector.broadcast %397 : f32 to vector<2x1xf32>
    %399 = tpu.concatenate %396, %398 in 0 : vector<2x1xf32>, vector<2x1xf32> -> vector<4x1xf32>
    %400 = vector.broadcast %399 : vector<4x1xf32> to vector<4x262xf32>
    %401 = arith.mulf %400, %362 : vector<4x262xf32>
    %402 = arith.addf %345, %401 : vector<4x262xf32>
    %c47 = arith.constant 47 : index
    %403 = memref.load %arg1[%c47] : memref<99xf32, #tpu.memory_space<smem>>
    %404 = vector.broadcast %403 : f32 to vector<2x1xf32>
    %c96 = arith.constant 96 : index
    %405 = memref.load %arg1[%c96] : memref<99xf32, #tpu.memory_space<smem>>
    %406 = vector.broadcast %405 : f32 to vector<2x1xf32>
    %407 = tpu.concatenate %404, %406 in 0 : vector<2x1xf32>, vector<2x1xf32> -> vector<4x1xf32>
    %408 = vector.broadcast %407 : vector<4x1xf32> to vector<4x262xf32>
    %409 = arith.mulf %408, %362 : vector<4x262xf32>
    %410 = arith.addf %353, %409 : vector<4x262xf32>
    %c48 = arith.constant 48 : index
    %411 = memref.load %arg1[%c48] : memref<99xf32, #tpu.memory_space<smem>>
    %412 = vector.broadcast %411 : f32 to vector<2x1xf32>
    %c97 = arith.constant 97 : index
    %413 = memref.load %arg1[%c97] : memref<99xf32, #tpu.memory_space<smem>>
    %414 = vector.broadcast %413 : f32 to vector<2x1xf32>
    %415 = tpu.concatenate %412, %414 in 0 : vector<2x1xf32>, vector<2x1xf32> -> vector<4x1xf32>
    %416 = vector.broadcast %415 : vector<4x1xf32> to vector<4x262xf32>
    %417 = arith.mulf %416, %362 : vector<4x262xf32>
    %418 = arith.addf %361, %417 : vector<4x262xf32>
    %c98 = arith.constant 98 : index
    %419 = memref.load %arg1[%c98] : memref<99xf32, #tpu.memory_space<smem>>
    %420 = vector.broadcast %419 : f32 to vector<2x256xf32>
    %421 = vector.extract_strided_slice %370 {offsets = [0, 0], sizes = [4, 256], strides = [1, 1]} : vector<4x262xf32> to vector<4x256xf32>
    %c0_28 = arith.constant 0 : index
    %c0_29 = arith.constant 0 : index
    %422 = vector.load %arg3[%c0_28, %c0_29] : memref<7x256xf32, #tpu.memory_space<vmem>>, vector<1x256xf32>
    %423 = vector.extract_strided_slice %421 {offsets = [0, 0], sizes = [2, 256], strides = [1, 1]} : vector<4x256xf32> to vector<2x256xf32>
    %424 = vector.extract_strided_slice %421 {offsets = [2, 0], sizes = [2, 256], strides = [1, 1]} : vector<4x256xf32> to vector<2x256xf32>
    %425 = arith.addf %423, %424 : vector<2x256xf32>
    %426 = vector.broadcast %422 : vector<1x256xf32> to vector<2x256xf32>
    %427 = arith.mulf %426, %425 : vector<2x256xf32>
    %428 = arith.addf %420, %427 : vector<2x256xf32>
    %429 = vector.extract_strided_slice %378 {offsets = [0, 1], sizes = [4, 256], strides = [1, 1]} : vector<4x262xf32> to vector<4x256xf32>
    %c1_30 = arith.constant 1 : index
    %c0_31 = arith.constant 0 : index
    %430 = vector.load %arg3[%c1_30, %c0_31] : memref<7x256xf32, #tpu.memory_space<vmem>>, vector<1x256xf32>
    %431 = vector.extract_strided_slice %429 {offsets = [0, 0], sizes = [2, 256], strides = [1, 1]} : vector<4x256xf32> to vector<2x256xf32>
    %432 = vector.extract_strided_slice %429 {offsets = [2, 0], sizes = [2, 256], strides = [1, 1]} : vector<4x256xf32> to vector<2x256xf32>
    %433 = arith.addf %431, %432 : vector<2x256xf32>
    %434 = vector.broadcast %430 : vector<1x256xf32> to vector<2x256xf32>
    %435 = arith.mulf %434, %433 : vector<2x256xf32>
    %436 = arith.addf %428, %435 : vector<2x256xf32>
    %437 = vector.extract_strided_slice %386 {offsets = [0, 2], sizes = [4, 256], strides = [1, 1]} : vector<4x262xf32> to vector<4x256xf32>
    %c2_32 = arith.constant 2 : index
    %c0_33 = arith.constant 0 : index
    %438 = vector.load %arg3[%c2_32, %c0_33] : memref<7x256xf32, #tpu.memory_space<vmem>>, vector<1x256xf32>
    %439 = vector.extract_strided_slice %437 {offsets = [0, 0], sizes = [2, 256], strides = [1, 1]} : vector<4x256xf32> to vector<2x256xf32>
    %440 = vector.extract_strided_slice %437 {offsets = [2, 0], sizes = [2, 256], strides = [1, 1]} : vector<4x256xf32> to vector<2x256xf32>
    %441 = arith.addf %439, %440 : vector<2x256xf32>
    %442 = vector.broadcast %438 : vector<1x256xf32> to vector<2x256xf32>
    %443 = arith.mulf %442, %441 : vector<2x256xf32>
    %444 = arith.addf %436, %443 : vector<2x256xf32>
    %445 = vector.extract_strided_slice %394 {offsets = [0, 3], sizes = [4, 256], strides = [1, 1]} : vector<4x262xf32> to vector<4x256xf32>
    %c3_34 = arith.constant 3 : index
    %c0_35 = arith.constant 0 : index
    %446 = vector.load %arg3[%c3_34, %c0_35] : memref<7x256xf32, #tpu.memory_space<vmem>>, vector<1x256xf32>
    %447 = vector.extract_strided_slice %445 {offsets = [0, 0], sizes = [2, 256], strides = [1, 1]} : vector<4x256xf32> to vector<2x256xf32>
    %448 = vector.extract_strided_slice %445 {offsets = [2, 0], sizes = [2, 256], strides = [1, 1]} : vector<4x256xf32> to vector<2x256xf32>
    %449 = arith.addf %447, %448 : vector<2x256xf32>
    %450 = vector.broadcast %446 : vector<1x256xf32> to vector<2x256xf32>
    %451 = arith.mulf %450, %449 : vector<2x256xf32>
    %452 = arith.addf %444, %451 : vector<2x256xf32>
    %453 = vector.extract_strided_slice %402 {offsets = [0, 4], sizes = [4, 256], strides = [1, 1]} : vector<4x262xf32> to vector<4x256xf32>
    %c4_36 = arith.constant 4 : index
    %c0_37 = arith.constant 0 : index
    %454 = vector.load %arg3[%c4_36, %c0_37] : memref<7x256xf32, #tpu.memory_space<vmem>>, vector<1x256xf32>
    %455 = vector.extract_strided_slice %453 {offsets = [0, 0], sizes = [2, 256], strides = [1, 1]} : vector<4x256xf32> to vector<2x256xf32>
    %456 = vector.extract_strided_slice %453 {offsets = [2, 0], sizes = [2, 256], strides = [1, 1]} : vector<4x256xf32> to vector<2x256xf32>
    %457 = arith.addf %455, %456 : vector<2x256xf32>
    %458 = vector.broadcast %454 : vector<1x256xf32> to vector<2x256xf32>
    %459 = arith.mulf %458, %457 : vector<2x256xf32>
    %460 = arith.addf %452, %459 : vector<2x256xf32>
    %461 = vector.extract_strided_slice %410 {offsets = [0, 5], sizes = [4, 256], strides = [1, 1]} : vector<4x262xf32> to vector<4x256xf32>
    %c5_38 = arith.constant 5 : index
    %c0_39 = arith.constant 0 : index
    %462 = vector.load %arg3[%c5_38, %c0_39] : memref<7x256xf32, #tpu.memory_space<vmem>>, vector<1x256xf32>
    %463 = vector.extract_strided_slice %461 {offsets = [0, 0], sizes = [2, 256], strides = [1, 1]} : vector<4x256xf32> to vector<2x256xf32>
    %464 = vector.extract_strided_slice %461 {offsets = [2, 0], sizes = [2, 256], strides = [1, 1]} : vector<4x256xf32> to vector<2x256xf32>
    %465 = arith.addf %463, %464 : vector<2x256xf32>
    %466 = vector.broadcast %462 : vector<1x256xf32> to vector<2x256xf32>
    %467 = arith.mulf %466, %465 : vector<2x256xf32>
    %468 = arith.addf %460, %467 : vector<2x256xf32>
    %469 = vector.extract_strided_slice %418 {offsets = [0, 6], sizes = [4, 256], strides = [1, 1]} : vector<4x262xf32> to vector<4x256xf32>
    %c6_40 = arith.constant 6 : index
    %c0_41 = arith.constant 0 : index
    %470 = vector.load %arg3[%c6_40, %c0_41] : memref<7x256xf32, #tpu.memory_space<vmem>>, vector<1x256xf32>
    %471 = vector.extract_strided_slice %469 {offsets = [0, 0], sizes = [2, 256], strides = [1, 1]} : vector<4x256xf32> to vector<2x256xf32>
    %472 = vector.extract_strided_slice %469 {offsets = [2, 0], sizes = [2, 256], strides = [1, 1]} : vector<4x256xf32> to vector<2x256xf32>
    %473 = arith.addf %471, %472 : vector<2x256xf32>
    %474 = vector.broadcast %470 : vector<1x256xf32> to vector<2x256xf32>
    %475 = arith.mulf %474, %473 : vector<2x256xf32>
    %476 = arith.addf %468, %475 : vector<2x256xf32>
    %cst_42 = arith.constant 0.000000e+00 : f32
    %477 = vector.broadcast %cst_42 : f32 to vector<2x256xf32>
    %478 = arith.subf %477, %476 : vector<2x256xf32>
    %479 = math.exp %478 : vector<2x256xf32>
    %cst_43 = arith.constant 1.000000e+00 : f32
    %480 = vector.broadcast %cst_43 : f32 to vector<2x256xf32>
    %481 = arith.addf %480, %479 : vector<2x256xf32>
    %482 = tpu.reciprocal %481 {approx = true} : vector<2x256xf32> -> vector<2x256xf32>
    %c0_44 = arith.constant 0 : index
    %c0_45 = arith.constant 0 : index
    %c0_46 = arith.constant 0 : index
    %483 = vector.load %arg2[%c0_44, %c0_45, %c0_46] : memref<2x4x256xf32, #tpu.memory_space<vmem>>, vector<2x4x256xf32>
    %484 = vector.shape_cast %482 : vector<2x256xf32> to vector<2x1x256xf32>
    %485 = vector.broadcast %484 : vector<2x1x256xf32> to vector<2x4x256xf32>
    %486 = arith.mulf %483, %485 : vector<2x4x256xf32>
    %c0_47 = arith.constant 0 : index
    %c0_48 = arith.constant 0 : index
    %c0_49 = arith.constant 0 : index
    %487 = vector.load %arg4[%c0_47, %c0_48, %c0_49] : memref<2x4x256xf32, #tpu.memory_space<vmem>>, vector<2x4x256xf32>
    tpu.vector_store %arg4[%c0_47, %c0_48, %c0_49], %486 {strides = array<i32>} : memref<2x4x256xf32, #tpu.memory_space<vmem>>, vector<2x4x256xf32>,
    return
  }
  func.func @transform_0(%arg0: i32, %arg1: memref<99xf32, #tpu.memory_space<smem>>) -> (i32, i32, i32) {
    %c0_i32 = arith.constant 0 : i32
    %c0_i32_0 = arith.constant 0 : i32
    %c0_i32_1 = arith.constant 0 : i32
    return %arg0, %c0_i32, %c0_i32_0 : i32, i32, i32
  }
  func.func @transform_1(%arg0: i32, %arg1: memref<99xf32, #tpu.memory_space<smem>>) -> (i32, i32) {
    %c0_i32 = arith.constant 0 : i32
    %c0_i32_0 = arith.constant 0 : i32
    %c0_i32_1 = arith.constant 0 : i32
    return %c0_i32, %c0_i32_0 : i32, i32
  }
  func.func @transform_2(%arg0: i32, %arg1: memref<99xf32, #tpu.memory_space<smem>>) -> (i32, i32, i32) {
    %c0_i32 = arith.constant 0 : i32
    %c0_i32_0 = arith.constant 0 : i32
    %c0_i32_1 = arith.constant 0 : i32
    return %arg0, %c0_i32, %c0_i32_0 : i32, i32, i32
  }
}

</mosaic_0001>

<bundles_post_ra>
// kernel: spatial_attention.1
= control target key start
LH: loop header
LB: loop body
LE: loop exit
PB: predicated region body
PF: predicated region fallthrough
CT: control target
= control target key end

     0   :  { %s2235_s0 = inlined_call_operand.vmem [shape: f32[99], index: 0, kind: input, shape index: {}]   ;;  %s2236_s1 = inlined_call_operand.vmem [shape: f32[2,4,256], index: 1, kind: input, shape index: {}]   ;;  %s2237_s2 = inlined_call_operand.vmem [shape: f32[7,256], index: 2, kind: input, shape index: {}]   ;;  %s2238_s3 = inlined_call_operand.vmem [shape: f32[2,4,256], index: 3, kind: output, shape index: {}]  }
   0x1   :  { %s8_s14 = sshll.u32 %s2235_s0, 4  ;;  %s9_s14 = int_to_ptr.vmem [resolvable:$true] %s8_s14 }
   0x2   :  { %s1493_s15 = scalar_lea.vmem %s9_s14, 16  ;;  %p1498_p1 = scmp.lt.s32.totalorder %s9_s14, %s9_s14 }
   0x3   :  { %p1494_p0 = scmp.ne.s32.totalorder %s9_s14, %s1493_s15  ;;  %p1499_p2 = scmp.lt.s32.totalorder %s1493_s15, %s1493_s15 }
   0x5   :  { %p1500_p3 = por %p1499_p2, %p1498_p1 }
   0x7   :  { %p1501_p4 = pnand %p1500_p3, %p1494_p0 }
   0x9   :  { %1504 = shalt.err (!%p1501_p4)  }
   0xa   :  { %s1507_s16 = smov [#allocation4]  }
   0xb   :  { %11 = dma.vmem_to_smem %s9_s14, 16, %s1507_s16, [#allocation3] }
   0xc   :  { %1505 = dma.done.wait [#allocation3], 16 }
   0xd   :  { %1506 = vsyncadd [#allocation3], 4294967280 }
   0xe   :  { %13 = sfence }
   0xf   :  { %s1360_s17 = sld [smem:[#allocation4 + $0x2]]  ;;  %s1361_s18 = sld [smem:[#allocation4 + $0x33]]  ;;  %v1508_v0 = vmov 0   ;;  %v1554_v1 = vld [vmem:[%s2236_s1] sm:$0xff]  ;;  %vm107_vm0 = vcmask 1041408   ;;  %vm26_vm1 = vcmask 1043456  }
  0x10   :  { %1479 = vset.pattern.permute.xlu1 %v1508_v0  ;;  %1478 = vset.pattern.permute.xlu0 %v1508_v0  ;;  %s1547_s19 = sld [smem:[#allocation4]]  ;;  %s1549_s0 = sld [smem:[#allocation4 + $0x31]]  ;;  %v1562_v2 = vcombine.high %v1554_v1, %v1554_v1  ;;  %v1571_v3 = vld [vmem:[%s2236_s1 + $0x8] sm:$0xff]  ;;  %v27_v4 = vsel %vm26_vm1, %v1554_v1, 0.0  ;;  %v59_v47 = vsel %vm26_vm1, %v1554_v1, -inf  ;;  %v1509_v63 = vmov 0.0  }
  0x11   :  { %s1556_s22 = sld [smem:[#allocation4 + $0x4]]  ;;  %s1558_s23 = sld [smem:[#allocation4 + $0x35]]  ;;  %v28_v5 = vrot.slane %v27_v4, 4  ;;  %v23_v10 = vcombine.high %v1571_v3, %v1571_v3  ;;  %v41_v23 = vsel %vm26_vm1, %v1571_v3, 0.0  ;;  %v60_v48 = vrot.slane %v59_v47, 4 }
  0x12   :  { %s1564_s24 = sld [smem:[#allocation4 + $0x1]]  ;;  %s1566_s25 = sld [smem:[#allocation4 + $0x32]]  ;;  %v34_v6 = vsel %vm26_vm1, %v1562_v2, 0.0  ;;  %v42_v33 = vrot.slane %v41_v23, 4  ;;  %v66_v49 = vsel %vm26_vm1, %v1562_v2, -inf  ;;  %v73_v50 = vsel %vm26_vm1, %v1571_v3, -inf }
  0x13   :  { %s1575_s28 = sld [smem:[#allocation4 + $0x6]]  ;;  %s1577_s29 = sld [smem:[#allocation4 + $0x37]]  ;;  %v35_v7 = vrot.slane %v34_v6, 4  ;;  %v29_v11 = vadd.f32 %v28_v5, %v27_v4  ;;  %v48_v37 = vsel %vm26_vm1, %v23_v10, 0.0  ;;  %v80_v51 = vsel %vm26_vm1, %v23_v10, -inf }
  0x14   :  { %s1581_s30 = sld [smem:[#allocation4 + $0x3]]  ;;  %s1583_s4 = sld [smem:[#allocation4 + $0x34]]  ;;  %v43_v45 = vadd.f32 %v42_v33, %v41_v23  ;;  %v49_v46 = vrot.slane %v48_v37, 4  ;;  %v67_v54 = vrot.slane %v66_v49, 4  ;;  %v74_v55 = vrot.slane %v73_v50, 4 }
  0x15   :  { %v163_v8 = vstv %s1360_s17  ;;  %v165_v9 = vstv %s1361_s18  ;;  %s1585_s5 = sld [smem:[#allocation4 + $0x9]]  ;;  %s1587_s6 = sld [smem:[#allocation4 + $0x3a]]  ;;  %v36_v15 = vadd.f32 %v35_v7, %v34_v6  ;;  %v30_v19 = vrot.slane %v29_v11, 2  ;;  %87 = vst [vmem:[#allocation2] sm:$0xf] %v1509_v63 }
  0x16   :  { %v166_v12 = vsel %vm107_vm0, %v163_v8, %v165_v9  ;;  %v118_v13 = vstv %s1547_s19  ;;  %v120_v14 = vstv %s1549_s0  ;;  %s1594_s7 = sld [smem:[#allocation4 + $0x5]]  ;;  %s1596_s8 = sld [smem:[#allocation4 + $0x36]]  ;;  %v44_v52 = vrot.slane %v43_v45, 2  ;;  %88 = vst [vmem:[#allocation2 + $0xc] sm:$0xf] %v1509_v63 }
  0x17   :  { %169 = vperm.xlu1 %1479, %v166_v12   ;;  %v121_v16 = vsel %vm107_vm0, %v118_v13, %v120_v14  ;;  %v195_v17 = vstv %s1556_s22  ;;  %v197_v18 = vstv %s1558_s23  ;;  %s1601_s9 = sld [smem:[#allocation4 + $0x7]]  ;;  %s1603_s10 = sld [smem:[#allocation4 + $0x38]]  ;;  %v37_v27 = vrot.slane %v36_v15, 2 }
  0x18   :  { %124 = vperm.xlu0 %1478, %v121_v16   ;;  %v198_v20 = vsel %vm107_vm0, %v195_v17, %v197_v18  ;;  %v146_v21 = vstv %s1564_s24  ;;  %v148_v22 = vstv %s1566_s25  ;;  %v31_v30 = vadd.f32 %v30_v19, %v29_v11  ;;  %s1625_s11 = sld [smem:[#allocation4 + $0x8]]  ;;  %s1627_s12 = sld [smem:[#allocation4 + $0x39]] }
  0x19   :  { %v149_v24 = vsel %vm107_vm0, %v146_v21, %v148_v22  ;;  %v227_v25 = vstv %s1575_s28  ;;  %v229_v26 = vstv %s1577_s29  ;;  %v38_v39 = vadd.f32 %v37_v27, %v36_v15  ;;  %s1376_s13 = sld [smem:[#allocation4 + $0xa]]  ;;  %s1377_s14 = sld [smem:[#allocation4 + $0x3b]] }
  0x1a   :  { %v179_v28 = vstv %s1581_s30  ;;  %v181_v29 = vstv %s1583_s4  ;;  %v230_v34 = vsel %vm107_vm0, %v227_v25, %v229_v26  ;;  %v32_v43 = vrot.slane %v31_v30, 1  ;;  %s1380_s15 = sld [smem:[#allocation4 + $0xc]]  ;;  %s1381_s16 = sld [smem:[#allocation4 + $0x3d]] }
  0x1b   :  { %201 = vperm.xlu1 %1479, %v198_v20   ;;  %v290_v31 = vstv %s1585_s5  ;;  %v292_v32 = vstv %s1587_s6  ;;  %v182_v38 = vsel %vm107_vm0, %v179_v28, %v181_v29  ;;  %v50_v53 = vadd.f32 %v49_v46, %v48_v37  ;;  %s1510_s17 = smov 51   ;;  %s1378_s18 = sld [smem:[#allocation4 + $0xb]] }
  0x1c   :  { %152 = vperm.xlu0 %1478, %v149_v24   ;;  %v211_v35 = vstv %s1594_s7  ;;  %v213_v36 = vstv %s1596_s8  ;;  %v293_v40 = vsel %vm107_vm0, %v290_v31, %v292_v32  ;;  %v39_v56 = vrot.slane %v38_v39, 1  ;;  %s1379_s19 = sld [smem:[#allocation4 + $0x3c]]  ;;  %s1384_s0 = sld [smem:[#allocation4 + $0xe]] }
  0x1d   :  { %v214_v41 = vsel %vm107_vm0, %v211_v35, %v213_v36  ;;  %v245_v42 = vstv %s1601_s9  ;;  %v247_v44 = vstv %s1603_s10  ;;  %v61_v57 = vmax.f32 %v59_v47, %v60_v48  ;;  %s1385_s20 = sld [smem:[#allocation4 + $0x3f]]  ;;  %s1511_s21 = smov 35  }
  0x1e   :  { %v81_v58 = vrot.slane %v80_v51, 4  ;;  %v45_v59 = vadd.f32 %v44_v52, %v43_v45  ;;  %v51_v60 = vrot.slane %v50_v53, 2  ;;  %v68_v61 = vmax.f32 %v66_v49, %v67_v54  ;;  %s1382_s22 = sld [smem:[#allocation4 + $0xd]]  ;;  %s1383_s23 = sld [smem:[#allocation4 + $0x3e]] }
  0x1f   :  { %233 = vperm.xlu1 %1479, %v230_v34   ;;  %v75_v62 = vmax.f32 %v73_v50, %v74_v55  ;;  %v248_v0 = vsel %vm107_vm0, %v245_v42, %v247_v44  ;;  %v33_v1 = vadd.f32 %v32_v43, %v31_v30  ;;  %v62_v2 = vrot.slane %v61_v57, 2  ;;  %s1386_s24 = sld [smem:[#allocation4 + $0xf]]  ;;  %s1387_s25 = sld [smem:[#allocation4 + $0x40]] }
  0x20   :  { %185 = vperm.xlu0 %1478, %v182_v38   ;;  %v82_v3 = vmax.f32 %v80_v51, %v81_v58  ;;  %v46_v4 = vrot.slane %v45_v59, 1  ;;  %v52_v5 = vadd.f32 %v51_v60, %v50_v53  ;;  %v69_v6 = vrot.slane %v68_v61, 2  ;;  %s1400_s26 = sld [smem:[#allocation4 + $0x16]]  ;;  %s1401_s27 = sld [smem:[#allocation4 + $0x47]] }
  0x21   :  { %v76_v7 = vrot.slane %v75_v62, 2  ;;  %v273_v8 = vstv %s1625_s11  ;;  %v275_v9 = vstv %s1627_s12  ;;  %v63_v10 = vmax.f32 %v61_v57, %v62_v2  ;;  %s1388_s28 = sld [smem:[#allocation4 + $0x10]]  ;;  %s1389_s29 = sld [smem:[#allocation4 + $0x41]] }
  0x22   :  { %v83_v11 = vrot.slane %v82_v3, 2  ;;  %v47_v12 = vadd.f32 %v46_v4, %v45_v59  ;;  %v53_v13 = vrot.slane %v52_v5, 1  ;;  %v70_v14 = vmax.f32 %v68_v61, %v69_v6  ;;  %s1402_s30 = sld [smem:[#allocation4 + $0x17]]  ;;  %s1403_s4 = sld [smem:[#allocation4 + $0x48]] }
  0x23   :  { %296 = vperm.xlu1 %1479, %v293_v40   ;;  %v77_v15 = vmax.f32 %v75_v62, %v76_v7  ;;  %v40_v16 = vadd.f32 %v39_v56, %v38_v39  ;;  %v64_v17 = vrot.slane %v63_v10, 1  ;;  %vm93_vm2 = vcmask 1041409   ;;  %s1512_s5 = smov 19   ;;  %s1666_s6 = sld [smem:[#allocation4 + $0x11]] }
  0x24   :  { %217 = vperm.xlu0 %1478, %v214_v41   ;;  %v84_v18 = vmax.f32 %v82_v3, %v83_v11  ;;  %v276_v19 = vsel %vm107_vm0, %v273_v8, %v275_v9  ;;  %v54_v20 = vadd.f32 %v53_v13, %v52_v5  ;;  %v71_v21 = vrot.slane %v70_v14, 1  ;;  %s1668_s7 = sld [smem:[#allocation4 + $0x42]]  ;;  %s1393_s9 = sld [smem:[#allocation4 + $0x43]] }
  0x25   :  { %v78_v22 = vrot.slane %v77_v15, 1  ;;  %v65_v23 = vmax.f32 %v63_v10, %v64_v17  ;;  %vm102_vm3 = vcmask 1043459   ;;  %v94_v27 = vsel %vm93_vm2, %v47_v12, %v33_v1  ;;  %s1392_s8 = sld [smem:[#allocation4 + $0x12]]  ;;  %s1672_s10 = sld [smem:[#allocation4 + $0x1d]] }
  0x26   :  { %v85_v24 = vrot.slane %v84_v18, 1  ;;  %v72_v25 = vmax.f32 %v70_v14, %v71_v21  ;;  %v95_v29 = vsel %vm93_vm2, %v54_v20, %v40_v16  ;;  %v306_v38 = vstv %s1376_s13  ;;  %s1674_s11 = sld [smem:[#allocation4 + $0x4e]]  ;;  %s1417_s13 = sld [smem:[#allocation4 + $0x4f]] }
  0x27   :  { %v79_v26 = vmax.f32 %v77_v15, %v78_v22  ;;  %v308_v39 = vstv %s1377_s14  ;;  %v338_v42 = vstv %s1380_s15  ;;  %v340_v43 = vstv %s1381_s16  ;;  %s1416_s12 = sld [smem:[#allocation4 + $0x1e]]  ;;  %s1404_s14 = sld [smem:[#allocation4 + $0x18]] }
  0x28   :  { %251 = vperm.xlu0 %1478, %v248_v0   ;;  %v86_v28 = vmax.f32 %v84_v18, %v85_v24  ;;  %v309_v41 = vsel %vm107_vm0, %v306_v38, %v308_v39  ;;  %v341_v44 = vsel %vm107_vm0, %v338_v42, %v340_v43  ;;  %v322_v45 = vstv %s1378_s18  ;;  %s1405_s15 = sld [smem:[#allocation4 + $0x49]]  ;;  %s1394_s16 = sld [smem:[#allocation4 + $0x13]] }
  0x29   :  { %v103_v30 = vsel %vm102_vm3, %v79_v26, %v65_v23  ;;  %v324_v46 = vstv %s1379_s19  ;;  %v372_v47 = vstv %s1384_s0  ;;  %v374_v48 = vstv %s1385_s20  ;;  %s1428_s18 = sld [smem:[#allocation4 + $0x24]]  ;;  %s1429_s19 = sld [smem:[#allocation4 + $0x55]] }
  0x2a   :  { %v104_v31 = vsel %vm102_vm3, %v86_v28, %v72_v25  ;;  %v108_v32 = vsel %vm107_vm0, %v94_v27, %v103_v30  ;;  %v325_v49 = vsel %vm107_vm0, %v322_v45, %v324_v46  ;;  %v375_v50 = vsel %vm107_vm0, %v372_v47, %v374_v48  ;;  %s1418_s0 = sld [smem:[#allocation4 + $0x1f]]  ;;  %s1419_s20 = sld [smem:[#allocation4 + $0x50]] }
  0x2b   :  { %v1643_v33 = vsel %vm107_vm0, %v95_v29, %v104_v31  ;;  %v354_v51 = vstv %s1382_s22  ;;  %v356_v52 = vstv %s1383_s23  ;;  %v400_v54 = vstv %s1386_s24  ;;  %s1407_s22 = sld [smem:[#allocation4 + $0x4a]]  ;;  %s1442_s23 = sld [smem:[#allocation4 + $0x2b]] }
  0x2c   :  { %279 = vperm.xlu0 %1478, %v276_v19   ;;  %v1646_v34 = vcombine.low %v108_v32, %v1643_v33  ;;  %v357_v53 = vsel %vm107_vm0, %v354_v51, %v356_v52  ;;  %v402_v55 = vstv %s1387_s25  ;;  %v527_v57 = vstv %s1400_s26  ;;  %s1443_s24 = sld [smem:[#allocation4 + $0x5c]]  ;;  %s1513_s25 = smov 3  }
  0x2d   :  { %v403_v56 = vsel %vm107_vm0, %v400_v54, %v402_v55  ;;  %v529_v58 = vstv %s1401_s27  ;;  %v417_v61 = vstv %s1388_s28  ;;  %v419_v62 = vstv %s1389_s29  ;;  %s1430_s26 = sld [smem:[#allocation4 + $0x25]]  ;;  %s1431_s27 = sld [smem:[#allocation4 + $0x56]] }
  0x2e   :  { %114 = vst [vmem:[#allocation2 + $0x4] sm:$0xff] %v1646_v34  ;;  %v530_v60 = vsel %vm107_vm0, %v527_v57, %v529_v58  ;;  %v548_v63 = vstv %s1402_s30  ;;  %v550_v0 = vstv %s1403_s4  ;;  %v420_v1 = vsel %vm107_vm0, %v417_v61, %v419_v62  ;;  %s1408_s28 = sld [smem:[#allocation4 + $0x1a]]  ;;  %s1409_s29 = sld [smem:[#allocation4 + $0x4b]] }
  0x2f   :  { %v551_v2 = vsel %vm107_vm0, %v548_v63, %v550_v0  ;;  %v433_v3 = vstv %s1666_s6  ;;  %v435_v4 = vstv %s1668_s7  ;;  %v449_v5 = vstv %s1392_s8  ;;  %s1396_s30 = sld [smem:[#allocation4 + $0x14]]  ;;  %s1397_s4 = sld [smem:[#allocation4 + $0x45]] }
  0x30   :  { %v451_v6 = vstv %s1393_s9  ;;  %v436_v7 = vsel %vm107_vm0, %v433_v3, %v435_v4  ;;  %v658_v9 = vstv %s1672_s10  ;;  %v660_v10 = vstv %s1674_s11  ;;  %s1421_s6 = sld [smem:[#allocation4 + $0x51]]  ;;  %s1444_s7 = sld [smem:[#allocation4 + $0x2c]]  ;;  %v755_v3 = vld [vmem:[#allocation2 + $0xc] sm:$0xf] }
  0x31   :  { %v452_v8 = vsel %vm107_vm0, %v449_v5, %v451_v6  ;;  %v675_v11 = vstv %s1416_s12  ;;  %v677_v12 = vstv %s1417_s13  ;;  %v661_v13 = vsel %vm107_vm0, %v658_v9, %v660_v10  ;;  %s1445_s8 = sld [smem:[#allocation4 + $0x5d]]  ;;  %s1432_s9 = sld [smem:[#allocation4 + $0x26]] }
  0x32   :  { %v678_v14 = vsel %vm107_vm0, %v675_v11, %v677_v12  ;;  %v564_v15 = vstv %s1404_s14  ;;  %v566_v16 = vstv %s1405_s15  ;;  %v465_v17 = vstv %s1394_s16  ;;  %s1433_s10 = sld [smem:[#allocation4 + $0x57]]  ;;  %s1422_s11 = sld [smem:[#allocation4 + $0x21]] }
  0x33   :  { %v567_v19 = vsel %vm107_vm0, %v564_v15, %v566_v16  ;;  %v785_v21 = vstv %s1428_s18  ;;  %v787_v22 = vstv %s1429_s19  ;;  %v691_v26 = vstv %s1418_s0  ;;  %s1423_s12 = sld [smem:[#allocation4 + $0x52]]  ;;  %s1514_s13 = smov 115  }
  0x34   :  { %v788_v23 = vsel %vm107_vm0, %v785_v21, %v787_v22  ;;  %v693_v27 = vstv %s1419_s20  ;;  %v582_v30 = vstv %s1407_s22  ;;  %v912_v31 = vstv %s1442_s23  ;;  %s1410_s14 = sld [smem:[#allocation4 + $0x1b]]  ;;  %s1411_s15 = sld [smem:[#allocation4 + $0x4c]] }
  0x35   :  { %v116_v35 = vld [vmem:[#allocation2 + $0x8] sm:$0xf]  ;;  %v1649_v36 = vld [vmem:[#allocation2] sm:$0xff]  ;;  %v694_v28 = vsel %vm107_vm0, %v691_v26, %v693_v27  ;;  %v914_v32 = vstv %s1443_s24  ;;  %v802_v38 = vstv %s1430_s26  ;;  %v804_v39 = vstv %s1431_s27  ;;  %s1434_s16 = sld [smem:[#allocation4 + $0x27]]  ;;  %s1424_s18 = sld [smem:[#allocation4 + $0x22]] }
  0x36   :  { %134 = vrot.lane.b32.xlu1 %v116_v35, %s1510_s17  ;;  %v1653_v37 = vcombine.high %v1649_v36, %v1649_v36  ;;  %130 = vrot.lane.b32.xlu0 %v1649_v36, %s1510_s17  ;;  %v243_v40 = vld [vmem:[#allocation2 + $0x8] sm:$0xf]  ;;  %v481_v43 = vstv %s1396_s30  ;;  %v1698_v45 = vcombine.low %v1643_v33, %v1643_v33  ;;  %v709_v48 = vstv %s1421_s6  ;;  %v628_v33 = vld [vmem:[#allocation2 + $0xc] sm:$0xf]  ;;  %s1425_s19 = sld [smem:[#allocation4 + $0x53]]  ;;  %s1446_s0 = sld [smem:[#allocation4 + $0x2d]] }
  0x37   :  { %v370_v59 = vld [vmem:[#allocation2 + $0x8] sm:$0xf]  ;;  %v931_v51 = vstv %s1445_s8  ;;  %s1447_s20 = sld [smem:[#allocation4 + $0x5e]]  ;;  %s1436_s22 = sld [smem:[#allocation4 + $0x28]]  ;;  %vm263_vm4 = vcmask 285696   ;;  %vm136_vm5 = vcmask 416768  }
  0x38   :  { %v497_v24 = vld [vmem:[#allocation2 + $0x8] sm:$0xff]  ;;  %v820_v54 = vstv %s1433_s10  ;;  %v723_v55 = vstv %s1422_s11  ;;  %s1437_s23 = sld [smem:[#allocation4 + $0x59]]  ;;  %s1717_s26 = sld [smem:[#allocation4 + $0x2e]]  ;;  %vm390_vm6 = vcmask 154624   ;;  %vm517_vm7 = vcmask 23552  }
  0x39   :  { %v536_v25 = vcombine.high %v497_v24, %v497_v24  ;;  %s1438_s24 = sld [smem:[#allocation4 + $0x29]]  ;;  %s1719_s27 = sld [smem:[#allocation4 + $0x5f]]  ;;  %vm648_vm8 = vcmask 941056   ;;  %vm775_vm9 = vcmask 809984   ;;  %vm902_vm10 = vcmask 678912  }
  0x3a   :  { %257 = vrot.lane.b32.xlu1 %v1649_v36, %s1511_s21  ;;  %259 = vrot.lane.b32.xlu0 %v1653_v37, %s1511_s21  ;;  %s1516_s30 = smov 83   ;;  %s1412_s6 = sld [smem:[#allocation4 + $0x1c]]  ;;  %vm1068_vm11 = vcmask 1039360   ;;  %vm1111_vm12 = vcmask 1031168   ;;  %vm1154_vm13 = vcmask 1022976   ;;  %vm1197_vm14 = vcmask 1014784  }
  0x3b   :  { %v834_v62 = vstv %s1434_s16  ;;  %s1736_s8 = sld [smem:[#allocation4 + $0x15]]  ;;  %s1440_s10 = sld [smem:[#allocation4 + $0x2a]]  ;;  %vm1240_vm15 = vcmask 1006592  }
  0x3c   :  { %v945_v5 = vstv %s1446_s0  ;;  %s1441_s11 = sld [smem:[#allocation4 + $0x5b]]  ;;  %s1519_s16 = smov 125  }
  0x3d   :  { %v947_v6 = vstv %s1447_s20  ;;  %v850_v10 = vstv %s1436_s22  ;;  %s2162_s0 = sld [smem:[#allocation4 + $0x62]] }
  0x3e   :  { %261 = vrot.lane.b32.xlu1 %v243_v40, %s1511_s21  ;;  %312 = vperm.xlu0 %1478, %v309_v41   ;;  %s1406_s21 = sld [smem:[#allocation4 + $0x19]]  ;;  %v596_v40 = vstv %s1408_s28  ;;  %v598_v41 = vstv %s1409_s29  ;;  %v852_v11 = vstv %s1437_s23  ;;  %s1721_s28 = sld [smem:[#allocation4 + $0x30]] }
  0x3f   :  { %v599_v42 = vsel %vm107_vm0, %v596_v40, %v598_v41  ;;  %s1453_s29 = sld [smem:[#allocation4 + $0x61]]  ;;  %v866_v16 = vstv %s1438_s24 }
  0x41   :  { %v884_v40 = vstv %s1440_s10 }
  0x42   :  { %132 = vrot.lane.b32.xlu1 %v1653_v37, %s1510_s17  ;;  %344 = vperm.xlu0 %1478, %v341_v44   ;;  %s1395_s17 = sld [smem:[#allocation4 + $0x44]]  ;;  %v483_v44 = vstv %s1397_s4  ;;  %s1729_s4 = sld [smem:[#allocation4 + $0x2f]]  ;;  %v886_v41 = vstv %s1441_s11 }
  0x43   :  { %v484_v46 = vsel %vm107_vm0, %v481_v43, %v483_v44 }
  0x44   :  { %v580_v29 = vstv %s1406_s21  ;;  %s1515_s21 = smov 99   ;;  %v993_v21 = vstv %s1721_s28 }
  0x45   :  { %v583_v35 = vsel %vm107_vm0, %v580_v29, %v582_v30  ;;  %v995_v22 = vstv %s1453_s29  ;;  %v630_v29 = vstv %s1412_s6 }
  0x46   :  { %328 = vperm.xlu1 %1479, %v325_v49   ;;  %378 = vperm.xlu0 %1478, %v375_v50   ;;  %v929_v50 = vstv %s1444_s7  ;;  %s1413_s7 = sld [smem:[#allocation4 + $0x4d]] }
  0x47   :  { %v932_v52 = vsel %vm107_vm0, %v929_v50, %v931_v51 }
  0x48   :  { %v467_v18 = vstv %s1395_s17  ;;  %s1435_s17 = sld [smem:[#allocation4 + $0x58]]  ;;  %v977_v27 = vstv %s1729_s4 }
  0x49   :  { %v468_v20 = vsel %vm107_vm0, %v465_v17, %v467_v18 }
  0x4a   :  { %360 = vperm.xlu1 %1479, %v357_v53   ;;  %386 = vrot.lane.b32.xlu0 %v1653_v37, %s1512_s5  ;;  %v818_v53 = vstv %s1432_s9  ;;  %s1738_s9 = sld [smem:[#allocation4 + $0x46]] }
  0x4b   :  { %v821_v57 = vsel %vm107_vm0, %v818_v53, %v820_v54 }
  0x4c   :  { %v632_v30 = vstv %s1413_s7 }
  0x4e   :  { %384 = vrot.lane.b32.xlu1 %v1649_v36, %s1512_s5  ;;  %406 = vperm.xlu0 %1478, %v403_v56   ;;  %v725_v56 = vstv %s1423_s12  ;;  %v836_v63 = vstv %s1435_s17  ;;  %s1426_s12 = sld [smem:[#allocation4 + $0x23]]  ;;  %s1520_s17 = smov 124  }
  0x4f   :  { %v726_v58 = vsel %vm107_vm0, %v723_v55, %v725_v56  ;;  %v837_v0 = vsel %vm107_vm0, %v834_v62, %v836_v63 }
  0x52   :  { %388 = vrot.lane.b32.xlu1 %v370_v59, %s1512_s5  ;;  %533 = vperm.xlu0 %1478, %v530_v60   ;;  %s1420_s5 = sld [smem:[#allocation4 + $0x20]]  ;;  %v612_v59 = vstv %s1410_s14  ;;  %v614_v60 = vstv %s1411_s15  ;;  %s1517_s14 = smov 126  }
  0x53   :  { %v615_v61 = vsel %vm107_vm0, %v612_v59, %v614_v60  ;;  %s1518_s15 = smov 127  }
  0x54   :  { %v757_v44 = vstv %s1426_s12 }
  0x56   :  { %423 = vperm.xlu1 %1479, %v420_v1   ;;  %554 = vperm.xlu0 %1478, %v551_v2   ;;  %v739_v1 = vstv %s1424_s18  ;;  %v741_v2 = vstv %s1425_s19  ;;  %s1521_s18 = smov 123   ;;  %s1522_s19 = smov 122  }
  0x57   :  { %v742_v4 = vsel %vm107_vm0, %v739_v1, %v741_v2 }
  0x58   :  { %v707_v47 = vstv %s1420_s5  ;;  %s1731_s5 = sld [smem:[#allocation4 + $0x60]] }
  0x59   :  { %v710_v49 = vsel %vm107_vm0, %v707_v47, %v709_v48 }
  0x5a   :  { %439 = vperm.xlu1 %1479, %v436_v7   ;;  %455 = vperm.xlu0 %1478, %v452_v8   ;;  %v948_v8 = vsel %vm107_vm0, %v945_v5, %v947_v6 }
  0x5e   :  { %664 = vperm.xlu1 %1479, %v661_v13   ;;  %681 = vperm.xlu0 %1478, %v678_v14   ;;  %v853_v13 = vsel %vm107_vm0, %v850_v10, %v852_v11  ;;  %v882_v14 = vld [vmem:[#allocation2 + $0xc] sm:$0xf] }
  0x62   :  { %570 = vperm.xlu1 %1479, %v567_v19   ;;  %471 = vperm.xlu0 %1478, %v468_v20   ;;  %v961_v19 = vstv %s1717_s26  ;;  %v963_v20 = vstv %s1719_s27 }
  0x66   :  { %791 = vperm.xlu1 %1479, %v788_v23   ;;  %513 = vrot.lane.b32.xlu0 %v1653_v37, %s1513_s25  ;;  %v915_v37 = vsel %vm107_vm0, %v912_v31, %v914_v32 }
  0x6a   :  { %511 = vrot.lane.b32.xlu1 %v1649_v36, %s1513_s25  ;;  %537 = vrot.lane.b32.xlu0 %v536_v25, %s1513_s25  ;;  %v805_v36 = vsel %vm107_vm0, %v802_v38, %v804_v39  ;;  %v996_v25 = vsel %vm107_vm0, %v993_v21, %v995_v22  ;;  %v499_v38 = vstv %s1736_s8  ;;  %v501_v39 = vstv %s1738_s9 }
  0x6e   :  { %515 = vrot.lane.b32.xlu1 %v497_v24, %s1513_s25  ;;  %697 = vperm.xlu0 %1478, %v694_v28   ;;  %s1439_s25 = sld [smem:[#allocation4 + $0x5a]]  ;;  %v964_v24 = vsel %vm107_vm0, %v961_v19, %v963_v20  ;;  %v979_v28 = vstv %s1731_s5 }
  0x6f   :  { %v980_v32 = vsel %vm107_vm0, %v977_v27, %v979_v28 }
  0x72   :  { %586 = vperm.xlu1 %1479, %v583_v35   ;;  %918 = vperm.xlu0 %1478, %v915_v37   ;;  %v633_v35 = vsel %vm107_vm0, %v630_v29, %v632_v30 }
  0x74   :  { %v868_v17 = vstv %s1439_s25 }
  0x76   :  { %808 = vperm.xlu1 %1479, %v805_v36   ;;  %602 = vperm.xlu0 %1478, %v599_v42   ;;  %v502_v36 = vsel %vm107_vm0, %v499_v38, %v501_v39  ;;  %v887_v42 = vsel %vm107_vm0, %v884_v40, %v886_v41 }
  0x7a   :  { %487 = vperm.xlu1 %1479, %v484_v46   ;;  %644 = vrot.lane.b32.xlu0 %v1698_v45, %s1514_s13 }
  0x7e   :  { %642 = vrot.lane.b32.xlu1 %v1646_v34, %s1514_s13  ;;  %713 = vperm.xlu0 %1478, %v710_v49  }
  0x82   :  { %646 = vrot.lane.b32.xlu1 %v628_v33, %s1514_s13  ;;  %935 = vperm.xlu0 %1478, %v932_v52   ;;  %s1427_s13 = sld [smem:[#allocation4 + $0x54]] }
  0x86   :  { %824 = vperm.xlu1 %1479, %v821_v57   ;;  %729 = vperm.xlu0 %1478, %v726_v58  }
  0x8a   :  { %618 = vperm.xlu1 %1479, %v615_v61   ;;  %771 = vrot.lane.b32.xlu0 %v1698_v45, %s1515_s21 }
  0x8e   :  { %769 = vrot.lane.b32.xlu1 %v1646_v34, %s1515_s21  ;;  %840 = vperm.xlu0 %1478, %v837_v0  }
  0x92   :  { %773 = vrot.lane.b32.xlu1 %v755_v3, %s1515_s21  ;;  %745 = vperm.xlu0 %1478, %v742_v4  }
  0x96   :  { %v1712_v7 = vpop.permute.xlu1 %169  ;;  %951 = vperm.xlu1 %1479, %v948_v8   ;;  %896 = vrot.lane.b32.xlu0 %v1646_v34, %s1516_s30  ;;  %v869_v34 = vsel %vm107_vm0, %v866_v16, %v868_v17 }
  0x97   :  { %v1715_v9 = vpop.permute.xlu0 %124 }
  0x9a   :  { %v1724_v12 = vpop.permute.xlu1 %201  ;;  %856 = vperm.xlu1 %1479, %v853_v13   ;;  %900 = vrot.lane.b32.xlu0 %v882_v14, %s1516_s30 }
  0x9b   :  { %v1727_v15 = vpop.permute.xlu0 %152 }
  0x9e   :  { %v1743_v23 = vpop.permute.xlu1 %233  ;;  %898 = vrot.lane.b32.xlu1 %v1698_v45, %s1516_s30  ;;  %872 = vperm.xlu0 %1478, %v869_v34   ;;  %v759_v45 = vstv %s1427_s13 }
  0x9f   :  { %v1734_v18 = vpop.permute.xlu0 %185  ;;  %v760_v52 = vsel %vm107_vm0, %v757_v44, %v759_v45  ;;  %vm1283_vm0 = vcmask 998400  }
  0xa2   :  { %967 = vperm.xlu1 %1479, %v964_v24   ;;  %999 = vperm.xlu0 %1478, %v996_v25   ;;  %v297_v31 = vpop.permute.xlu1 %296 }
  0xa3   :  { %v218_v26 = vpop.permute.xlu0 %217 }
  0xa6   :  { %983 = vperm.xlu1 %1479, %v980_v32   ;;  %636 = vperm.xlu0 %1478, %v633_v35  }
  0xa7   :  { %v252_v37 = vpop.permute.xlu0 %251 }
  0xa8   :  { %v135_v46 = vpop.permute.xlu1 %134 }
  0xa9   :  { %v158_v47 = vmul.f32 %v1727_v15, %v135_v46  ;;  %v190_v48 = vmul.f32 %v1734_v18, %v135_v46  ;;  %v222_v49 = vmul.f32 %v218_v26, %v135_v46  ;;  %v1759_v50 = vmul.f32 %v1724_v12, %v135_v46 }
  0xaa   :  { %505 = vperm.xlu1 %1479, %v502_v36   ;;  %890 = vperm.xlu0 %1478, %v887_v42   ;;  %v1762_v51 = vmul.f32 %v1743_v23, %v135_v46  ;;  %v174_v33 = vmul.f32 %v1712_v7, %v135_v46 }
  0xab   :  { %v280_v43 = vpop.permute.xlu0 %279 }
  0xac   :  { %v258_v54 = vpop.permute.xlu1 %257 }
  0xae   :  { %763 = vperm.xlu1 %1479, %v760_v52  }
  0xaf   :  { %v131_v53 = vpop.permute.xlu0 %130 }
  0xb0   :  { %v1766_v56 = vpop.permute.xlu1 %261 }
  0xb1   :  { %v285_v58 = vmul.f32 %v280_v43, %v1766_v56  ;;  %v301_v0 = vmul.f32 %v297_v31, %v1766_v56 }
  0xb3   :  { %v260_v55 = vpop.permute.xlu0 %259  ;;  %v1771_v2 = vadd.f32 %v285_v58, %v158_v47  ;;  %v1773_v5 = vadd.f32 %v301_v0, %v174_v33 }
  0xb4   :  { %v264_v57 = vsel %vm263_vm4, %v258_v54, %v260_v55  ;;  %v265_v59 = vsel %vm263_vm4, %v260_v55, %v1766_v56  ;;  %v133_v4 = vpop.permute.xlu1 %132 }
  0xb5   :  { %v283_v60 = vmul.f32 %v280_v43, %v264_v57  ;;  %v299_v61 = vmul.f32 %v297_v31, %v264_v57  ;;  %v284_v62 = vmul.f32 %v280_v43, %v265_v59  ;;  %v300_v63 = vmul.f32 %v297_v31, %v265_v59 }
  0xb6   :  { %v268_v1 = vmul.f32 %v264_v57, %v252_v37  ;;  %v269_v3 = vmul.f32 %v265_v59, %v252_v37  ;;  %v137_v6 = vsel %vm136_vm5, %v131_v53, %v133_v4  ;;  %v138_v8 = vsel %vm136_vm5, %v133_v4, %v135_v46 }
  0xb7   :  { %v157_v10 = vmul.f32 %v1727_v15, %v138_v8  ;;  %v188_v11 = vmul.f32 %v1734_v18, %v137_v6  ;;  %v189_v13 = vmul.f32 %v1734_v18, %v138_v8  ;;  %v220_v14 = vmul.f32 %v218_v26, %v137_v6 }
  0xb8   :  { %v221_v16 = vmul.f32 %v218_v26, %v138_v8  ;;  %v204_v17 = vmul.f32 %v1724_v12, %v137_v6  ;;  %v205_v34 = vmul.f32 %v1724_v12, %v138_v8  ;;  %v236_v19 = vmul.f32 %v1743_v23, %v137_v6 }
  0xb9   :  { %v237_v20 = vmul.f32 %v1743_v23, %v138_v8  ;;  %v156_v21 = vmul.f32 %v1727_v15, %v137_v6  ;;  %v172_v22 = vmul.f32 %v1712_v7, %v137_v6  ;;  %v173_v24 = vmul.f32 %v1712_v7, %v138_v8 }
  0xba   :  { %v141_v25 = vmul.f32 %v137_v6, %v1715_v9  ;;  %v142_v18 = vmul.f32 %v138_v8, %v1715_v9  ;;  %v287_v27 = vadd.f32 %v284_v62, %v157_v10 }
  0xbb   :  { %v286_v26 = vadd.f32 %v283_v60, %v156_v21  ;;  %v302_v28 = vadd.f32 %v299_v61, %v172_v22  ;;  %v303_v29 = vadd.f32 %v300_v63, %v173_v24 }
  0xbc   :  { %v270_v30 = vadd.f32 %v268_v1, %v141_v25  ;;  %v271_v12 = vadd.f32 %v269_v3, %v142_v18 }
  0xbd   :  { %v313_v31 = vpop.permute.xlu0 %312 }
  0xbe   :  { %v315_v32 = vmul.f32 %v313_v31, %v264_v57  ;;  %v316_v35 = vmul.f32 %v313_v31, %v265_v59  ;;  %v317_v23 = vmul.f32 %v313_v31, %v1766_v56 }
  0xc0   :  { %v318_v15 = vadd.f32 %v315_v32, %v188_v11  ;;  %v319_v37 = vadd.f32 %v316_v35, %v189_v13  ;;  %v320_v38 = vadd.f32 %v317_v23, %v190_v48 }
  0xc1   :  { %v345_v39 = vpop.permute.xlu0 %344 }
  0xc2   :  { %v347_v7 = vmul.f32 %v345_v39, %v264_v57  ;;  %v348_v40 = vmul.f32 %v345_v39, %v265_v59  ;;  %v349_v41 = vmul.f32 %v345_v39, %v1766_v56 }
  0xc4   :  { %v1789_v9 = vadd.f32 %v347_v7, %v220_v14  ;;  %v1791_v36 = vadd.f32 %v348_v40, %v221_v16  ;;  %v1793_v42 = vadd.f32 %v349_v41, %v222_v49 }
  0xc5   :  { %v329_v43 = vpop.permute.xlu1 %328  ;;  %v379_v44 = vpop.permute.xlu0 %378 }
  0xc6   :  { %v331_v45 = vmul.f32 %v329_v43, %v264_v57  ;;  %v332_v46 = vmul.f32 %v329_v43, %v265_v59  ;;  %v333_v47 = vmul.f32 %v329_v43, %v1766_v56 }
  0xc8   :  { %v334_v33 = vadd.f32 %v331_v45, %v204_v17  ;;  %v335_v52 = vadd.f32 %v332_v46, %v205_v34  ;;  %v336_v48 = vadd.f32 %v333_v47, %v1759_v50 }
  0xc9   :  { %v361_v53 = vpop.permute.xlu1 %360  ;;  %v387_v54 = vpop.permute.xlu0 %386 }
  0xca   :  { %v363_v55 = vmul.f32 %v361_v53, %v264_v57  ;;  %v364_v58 = vmul.f32 %v361_v53, %v265_v59  ;;  %v365_v60 = vmul.f32 %v361_v53, %v1766_v56 }
  0xcc   :  { %v1798_v61 = vadd.f32 %v363_v55, %v236_v19  ;;  %v1800_v49 = vadd.f32 %v364_v58, %v237_v20  ;;  %v1803_v62 = vadd.f32 %v365_v60, %v1762_v51 }
  0xcd   :  { %v385_v63 = vpop.permute.xlu1 %384  ;;  %v407_v0 = vpop.permute.xlu0 %406 }
  0xce   :  { %v1805_v1 = vsel %vm390_vm6, %v385_v63, %v387_v54 }
  0xcf   :  { %v410_v50 = vmul.f32 %v407_v0, %v1805_v1  ;;  %v395_v3 = vmul.f32 %v1805_v1, %v379_v44 }
  0xd1   :  { %v413_v57 = vadd.f32 %v410_v50, %v286_v26  ;;  %v1809_v59 = vpop.permute.xlu1 %388  ;;  %v534_v56 = vpop.permute.xlu0 %533  ;;  %v1811_v4 = vadd.f32 %v395_v3, %v270_v30 }
  0xd2   :  { %v1814_v6 = vsel %vm390_vm6, %v387_v54, %v1809_v59  ;;  %v412_v51 = vmul.f32 %v407_v0, %v1809_v59 }
  0xd3   :  { %v396_v8 = vmul.f32 %v1814_v6, %v379_v44  ;;  %v411_v10 = vmul.f32 %v407_v0, %v1814_v6 }
  0xd4   :  { %v415_v11 = vadd.f32 %v412_v51, %v1771_v2 }
  0xd5   :  { %v424_v13 = vpop.permute.xlu1 %423  ;;  %v1820_v14 = vpop.permute.xlu0 %554  ;;  %v1822_v16 = vadd.f32 %v396_v8, %v271_v12  ;;  %v414_v17 = vadd.f32 %v411_v10, %v287_v27 }
  0xd6   :  { %v426_v34 = vmul.f32 %v424_v13, %v1805_v1  ;;  %v427_v19 = vmul.f32 %v424_v13, %v1814_v6  ;;  %v428_v20 = vmul.f32 %v424_v13, %v1809_v59 }
  0xd8   :  { %v429_v21 = vadd.f32 %v426_v34, %v302_v28  ;;  %v430_v22 = vadd.f32 %v427_v19, %v303_v29  ;;  %v1828_v24 = vadd.f32 %v428_v20, %v1773_v5 }
  0xd9   :  { %v440_v25 = vpop.permute.xlu1 %439  ;;  %v456_v18 = vpop.permute.xlu0 %455 }
  0xda   :  { %v442_v2 = vmul.f32 %v440_v25, %v1805_v1  ;;  %v443_v26 = vmul.f32 %v440_v25, %v1814_v6  ;;  %v444_v30 = vmul.f32 %v440_v25, %v1809_v59  ;;  %v458_v27 = vmul.f32 %v456_v18, %v1805_v1 }
  0xdb   :  { %v459_v12 = vmul.f32 %v456_v18, %v1814_v6  ;;  %v460_v31 = vmul.f32 %v456_v18, %v1809_v59 }
  0xdc   :  { %v445_v32 = vadd.f32 %v442_v2, %v318_v15  ;;  %v446_v28 = vadd.f32 %v443_v26, %v319_v37  ;;  %v1836_v29 = vadd.f32 %v444_v30, %v320_v38  ;;  %v1838_v5 = vadd.f32 %v458_v27, %v334_v33 }
  0xdd   :  { %v1840_v35 = vadd.f32 %v459_v12, %v335_v52  ;;  %v1842_v23 = vadd.f32 %v460_v31, %v336_v48  ;;  %v1844_v39 = vpop.permute.xlu1 %664  ;;  %v1846_v7 = vpop.permute.xlu0 %681 }
  0xe1   :  { %v1848_v40 = vpop.permute.xlu1 %570  ;;  %v472_v41 = vpop.permute.xlu0 %471 }
  0xe2   :  { %v474_v43 = vmul.f32 %v472_v41, %v1805_v1  ;;  %v475_v15 = vmul.f32 %v472_v41, %v1814_v6  ;;  %v476_v37 = vmul.f32 %v472_v41, %v1809_v59 }
  0xe4   :  { %v1854_v38 = vadd.f32 %v474_v43, %v1789_v9  ;;  %v1857_v44 = vadd.f32 %v475_v15, %v1791_v36  ;;  %v1860_v45 = vadd.f32 %v476_v37, %v1793_v42 }
  0xe5   :  { %v1862_v46 = vpop.permute.xlu1 %791  ;;  %v514_v47 = vpop.permute.xlu0 %513 }
  0xe9   :  { %v512_v33 = vpop.permute.xlu1 %511  ;;  %v538_v52 = vpop.permute.xlu0 %537 }
  0xea   :  { %v1864_v48 = vsel %vm517_vm7, %v512_v33, %v514_v47 }
  0xeb   :  { %v541_v53 = vmul.f32 %v534_v56, %v1864_v48  ;;  %v557_v9 = vmul.f32 %v1820_v14, %v1864_v48  ;;  %v573_v36 = vmul.f32 %v1848_v40, %v1864_v48 }
  0xed   :  { %v516_v54 = vpop.permute.xlu1 %515  ;;  %v1871_v55 = vpop.permute.xlu0 %697  ;;  %v544_v42 = vadd.f32 %v541_v53, %v413_v57  ;;  %v560_v58 = vadd.f32 %v557_v9, %v429_v21  ;;  %v1873_v60 = vadd.f32 %v573_v36, %v445_v32 }
  0xee   :  { %v1875_v63 = vsel %vm517_vm7, %v514_v47, %v516_v54  ;;  %v1877_v0 = vsel %vm517_vm7, %v516_v54, %v538_v52 }
  0xef   :  { %v543_v50 = vmul.f32 %v1877_v0, %v534_v56  ;;  %v542_v3 = vmul.f32 %v534_v56, %v1875_v63  ;;  %v558_v51 = vmul.f32 %v1820_v14, %v1875_v63  ;;  %v574_v8 = vmul.f32 %v1848_v40, %v1875_v63 }
  0xf0   :  { %v559_v53 = vmul.f32 %v1820_v14, %v1877_v0  ;;  %v575_v54 = vmul.f32 %v1848_v40, %v1877_v0 }
  0xf1   :  { %v587_v10 = vpop.permute.xlu1 %586  ;;  %v1885_v13 = vpop.permute.xlu0 %918  ;;  %v1887_v57 = vadd.f32 %v543_v50, %v415_v11  ;;  %v545_v34 = vadd.f32 %v542_v3, %v414_v17  ;;  %v561_v19 = vadd.f32 %v558_v51, %v430_v22  ;;  %v1889_v20 = vadd.f32 %v574_v8, %v446_v28 }
  0xf2   :  { %v591_v50 = vmul.f32 %v587_v10, %v1877_v0 }
  0xf5   :  { %v1891_v21 = vpop.permute.xlu1 %808  ;;  %v603_v25 = vpop.permute.xlu0 %602 }
  0xf6   :  { %v605_v3 = vmul.f32 %v603_v25, %v1864_v48  ;;  %v606_v51 = vmul.f32 %v603_v25, %v1875_v63  ;;  %v607_v8 = vmul.f32 %v603_v25, %v1877_v0  ;;  %v594_v25 = vadd.f32 %v591_v50, %v1842_v23 }
  0xf8   :  { %v610_v23 = vadd.f32 %v607_v8, %v1860_v45 }
  0xf9   :  { %v488_v18 = vpop.permute.xlu1 %487  ;;  %v645_v56 = vpop.permute.xlu0 %644 }
  0xfa   :  { %v490_v2 = vmul.f32 %v488_v18, %v1805_v1  ;;  %v491_v26 = vmul.f32 %v488_v18, %v1814_v6  ;;  %v492_v30 = vmul.f32 %v488_v18, %v1809_v59 }
  0xfc   :  { %v1897_v27 = vadd.f32 %v490_v2, %v1798_v61  ;;  %v1900_v11 = vadd.f32 %v491_v26, %v1800_v49  ;;  %v1903_v17 = vadd.f32 %v492_v30, %v1803_v62 }
  0xfd   :  { %v643_v22 = vpop.permute.xlu1 %642  ;;  %v714_v12 = vpop.permute.xlu0 %713 }
  0xfe   :  { %v1905_v31 = vsel %vm648_vm8, %v643_v22, %v645_v56 }
  0xff   :  { %v668_v1 = vmul.f32 %v1844_v39, %v1905_v31  ;;  %v684_v59 = vmul.f32 %v1846_v7, %v1905_v31  ;;  %v716_v18 = vmul.f32 %v714_v12, %v1905_v31 }
 0x101   :  { %v1911_v6 = vpop.permute.xlu1 %646  ;;  %v1913_v61 = vpop.permute.xlu0 %935  ;;  %v1915_v32 = vadd.f32 %v668_v1, %v544_v42  ;;  %v1917_v49 = vadd.f32 %v684_v59, %v560_v58  ;;  %v589_v42 = vmul.f32 %v587_v10, %v1864_v48  ;;  %v590_v58 = vmul.f32 %v587_v10, %v1875_v63 }
 0x102   :  { %v1920_v62 = vsel %vm648_vm8, %v645_v56, %v1911_v6  ;;  %v578_v56 = vadd.f32 %v575_v54, %v1836_v29  ;;  %v700_v10 = vmul.f32 %v1871_v55, %v1905_v31  ;;  %v718_v26 = vmul.f32 %v714_v12, %v1911_v6 }
 0x103   :  { %v669_v28 = vmul.f32 %v1844_v39, %v1920_v62  ;;  %v685_v41 = vmul.f32 %v1846_v7, %v1920_v62  ;;  %v592_v40 = vadd.f32 %v589_v42, %v1838_v5  ;;  %v593_v2 = vadd.f32 %v590_v58, %v1840_v35 }
 0x104   :  { %v686_v30 = vmul.f32 %v1846_v7, %v1911_v6  ;;  %v717_v5 = vmul.f32 %v714_v12, %v1920_v62  ;;  %v670_v29 = vmul.f32 %v1844_v39, %v1911_v6  ;;  %v702_v22 = vmul.f32 %v1871_v55, %v1911_v6 }
 0x105   :  { %v1926_v43 = vpop.permute.xlu1 %824  ;;  %v730_v15 = vpop.permute.xlu0 %729  ;;  %v1928_v37 = vadd.f32 %v669_v28, %v545_v34  ;;  %v1930_v47 = vadd.f32 %v685_v41, %v561_v19  ;;  %v562_v19 = vadd.f32 %v559_v53, %v1828_v24  ;;  %v608_v24 = vadd.f32 %v605_v3, %v1854_v38 }
 0x106   :  { %v609_v35 = vadd.f32 %v606_v51, %v1857_v44  ;;  %v732_v1 = vmul.f32 %v730_v15, %v1905_v31  ;;  %v701_v7 = vmul.f32 %v1871_v55, %v1920_v62  ;;  %v1974_v38 = vadd.f32 %v716_v18, %v592_v40 }
 0x107   :  { %v733_v12 = vmul.f32 %v730_v15, %v1920_v62  ;;  %v1980_v41 = vadd.f32 %v700_v10, %v1873_v60  ;;  %v721_v44 = vadd.f32 %v718_v26, %v594_v25  ;;  %v689_v45 = vadd.f32 %v686_v30, %v562_v19 }
 0x108   :  { %v734_v55 = vmul.f32 %v730_v15, %v1911_v6  ;;  %v1987_v42 = vadd.f32 %v717_v5, %v593_v2  ;;  %v673_v58 = vadd.f32 %v670_v29, %v1887_v57  ;;  %v705_v50 = vadd.f32 %v702_v22, %v578_v56 }
 0x109   :  { %v1932_v33 = vpop.permute.xlu1 %618  ;;  %v772_v52 = vpop.permute.xlu0 %771  ;;  %v1990_v3 = vadd.f32 %v732_v1, %v608_v24  ;;  %v2002_v40 = vadd.f32 %v701_v7, %v1889_v20  ;;  %v2004_v15 = vadd.f32 %v733_v12, %v609_v35 }
 0x10a   :  { %v621_v60 = vmul.f32 %v1932_v33, %v1864_v48  ;;  %v622_v57 = vmul.f32 %v1932_v33, %v1875_v63  ;;  %v2014_v26 = vadd.f32 %v734_v55, %v610_v23  ;;  %v2024_v5 = vmul.f32 %v1932_v33, %v1877_v0 }
 0x10c   :  { %v2027_v29 = vadd.f32 %v621_v60, %v1897_v27  ;;  %v2032_v7 = vadd.f32 %v622_v57, %v1900_v11 }
 0x10d   :  { %v770_v9 = vpop.permute.xlu1 %769  ;;  %v1936_v36 = vpop.permute.xlu0 %840 }
 0x10e   :  { %v1995_v51 = vsel %vm775_vm9, %v770_v9, %v772_v52 }
 0x10f   :  { %v795_v24 = vmul.f32 %v1862_v46, %v1995_v51  ;;  %v843_v27 = vmul.f32 %v1936_v36, %v1995_v51 }
 0x111   :  { %v1946_v14 = vpop.permute.xlu1 %773  ;;  %v1948_v34 = vpop.permute.xlu0 %745  ;;  %v798_v11 = vadd.f32 %v795_v24, %v1915_v32 }
 0x112   :  { %v813_v39 = vmul.f32 %v1891_v21, %v1946_v14  ;;  %v797_v53 = vmul.f32 %v1862_v46, %v1946_v14  ;;  %v829_v54 = vmul.f32 %v1926_v43, %v1946_v14  ;;  %v2018_v20 = vsel %vm775_vm9, %v772_v52, %v1946_v14 }
 0x113   :  { %v845_v0 = vmul.f32 %v1936_v36, %v1946_v14  ;;  %v844_v32 = vmul.f32 %v1936_v36, %v2018_v20  ;;  %v846_v36 = vadd.f32 %v843_v27, %v1974_v38 }
 0x114   :  { %v816_v18 = vadd.f32 %v813_v39, %v689_v45  ;;  %v800_v10 = vadd.f32 %v797_v53, %v673_v58  ;;  %v832_v2 = vadd.f32 %v829_v54, %v705_v50  ;;  %v796_v45 = vmul.f32 %v1862_v46, %v2018_v20 }
 0x115   :  { %v1970_v59 = vpop.permute.xlu1 %951  ;;  %v897_v28 = vpop.permute.xlu0 %896  ;;  %v811_v53 = vmul.f32 %v1891_v21, %v1995_v51  ;;  %v827_v54 = vmul.f32 %v1926_v43, %v1995_v51  ;;  %v847_v38 = vadd.f32 %v844_v32, %v1987_v42 }
 0x119   :  { %v1997_v8 = vpop.permute.xlu1 %856  ;;  %v1999_v19 = vpop.permute.xlu0 %900 }
 0x11a   :  { %v940_v56 = vmul.f32 %v1913_v61, %v1999_v19  ;;  %v924_v9 = vmul.f32 %v1885_v13, %v1999_v19  ;;  %v956_v25 = vmul.f32 %v1970_v59, %v1999_v19 }
 0x11c   :  { %v943_v30 = vadd.f32 %v940_v56, %v816_v18  ;;  %v927_v23 = vadd.f32 %v924_v9, %v800_v10  ;;  %v959_v1 = vadd.f32 %v956_v25, %v832_v2  ;;  %v848_v18 = vadd.f32 %v845_v0, %v721_v44 }
 0x11d   :  { %v899_v22 = vpop.permute.xlu1 %898  ;;  %v2029_v35 = vpop.permute.xlu0 %872  ;;  %v812_v10 = vmul.f32 %v1891_v21, %v2018_v20  ;;  %v799_v2 = vadd.f32 %v796_v45, %v1928_v37  ;;  %v859_v44 = vmul.f32 %v1997_v8, %v1995_v51  ;;  %v814_v21 = vadd.f32 %v811_v53, %v1917_v49 }
 0x11e   :  { %v2035_v52 = vsel %vm902_vm10, %v897_v28, %v899_v22  ;;  %v2039_v12 = vsel %vm902_vm10, %v899_v22, %v1999_v19  ;;  %v1084_v33 = vrot.slane %v943_v30, 2  ;;  %v1041_v39 = vrot.slane %v927_v23, 2 }
 0x11f   :  { %v922_v28 = vmul.f32 %v1885_v13, %v2035_v52  ;;  %v1127_v57 = vrot.slane %v959_v1, 2  ;;  %v923_v46 = vmul.f32 %v1885_v13, %v2039_v12  ;;  %v828_v13 = vmul.f32 %v1926_v43, %v2018_v20 }
 0x120   :  { %v1090_v50 = vadd.f32 %v1084_v33, %v943_v30  ;;  %v1047_v60 = vadd.f32 %v1041_v39, %v927_v23  ;;  %v830_v0 = vadd.f32 %v827_v54, %v1980_v41  ;;  %v2077_v37 = vmul.f32 %v1948_v34, %v1905_v31 }
 0x121   :  { %v968_v55 = vpop.permute.xlu1 %967  ;;  %v2054_v58 = vpop.permute.xlu0 %999  ;;  %v925_v9 = vadd.f32 %v922_v28, %v798_v11  ;;  %v1133_v24 = vadd.f32 %v1127_v57, %v959_v1  ;;  %v926_v23 = vadd.f32 %v923_v46, %v799_v2  ;;  %v2081_v43 = vmul.f32 %v1948_v34, %v1920_v62 }
 0x122   :  { %v972_v56 = vmul.f32 %v968_v55, %v1999_v19  ;;  %1109 = vrot.lane.b32.xlu0 %v1090_v50, %s1517_s14  ;;  %1066 = vrot.lane.b32.xlu1 %v1047_v60, %s1518_s15  ;;  %v815_v27 = vadd.f32 %v812_v10, %v1930_v47  ;;  %v860_v49 = vmul.f32 %v1997_v8, %v2018_v20 }
 0x123   :  { %v1039_v22 = vrot.slane %v925_v9, 2  ;;  %v2089_v1 = vmul.f32 %v1997_v8, %v1946_v14  ;;  %v831_v39 = vadd.f32 %v828_v13, %v2002_v40  ;;  %v862_v45 = vadd.f32 %v859_v44, %v1990_v3 }
 0x124   :  { %v975_v25 = vadd.f32 %v972_v56, %v848_v18  ;;  %v971_v42 = vmul.f32 %v968_v55, %v2039_v12  ;;  %v939_v47 = vmul.f32 %v1913_v61, %v2039_v12  ;;  %v1040_v54 = vrot.slane %v926_v23, 2 }
 0x125   :  { %v2072_v30 = vpop.permute.xlu1 %983  ;;  %v637_v41 = vpop.permute.xlu0 %636  ;;  %v1045_v11 = vadd.f32 %v1039_v22, %v925_v9  ;;  %v938_v8 = vmul.f32 %v1913_v61, %v2035_v52  ;;  %v954_v50 = vmul.f32 %v1970_v59, %v2035_v52  ;;  %v970_v60 = vmul.f32 %v968_v55, %v2035_v52 }
 0x126   :  { %1152 = vrot.lane.b32.xlu1 %v1133_v24, %s1519_s16  ;;  %v1170_v33 = vrot.slane %v975_v25, 2  ;;  %v653_v40 = vmul.f32 %v1905_v31, %v637_v41  ;;  %v942_v46 = vadd.f32 %v939_v47, %v815_v27  ;;  %v654_v61 = vmul.f32 %v1920_v62, %v637_v41 }
 0x127   :  { %v941_v32 = vadd.f32 %v938_v8, %v814_v21  ;;  %v957_v18 = vadd.f32 %v954_v50, %v830_v0  ;;  %v955_v31 = vmul.f32 %v1970_v59, %v2039_v12  ;;  %v1046_v9 = vadd.f32 %v1040_v54, %v926_v23 }
 0x128   :  { %v1176_v53 = vadd.f32 %v1170_v33, %v975_v25  ;;  %v1083_v2 = vrot.slane %v942_v46, 2  ;;  %v973_v27 = vadd.f32 %v970_v60, %v846_v36  ;;  %v987_v41 = vmul.f32 %v2072_v30, %v2039_v12 }
 0x129   :  { %v506_v28 = vpop.permute.xlu1 %505  ;;  %v891_v10 = vpop.permute.xlu0 %890  ;;  %v1082_v13 = vrot.slane %v941_v32, 2  ;;  %v1125_v62 = vrot.slane %v957_v18, 2  ;;  %v958_v59 = vadd.f32 %v955_v31, %v831_v39  ;;  %v875_v47 = vmul.f32 %v2029_v35, %v1995_v51 }
 0x12a   :  { %v522_v3 = vmul.f32 %v1864_v48, %v506_v28  ;;  %v523_v57 = vmul.f32 %v1875_v63, %v506_v28  ;;  %1195 = vrot.lane.b32.xlu0 %v1176_v53, %s1520_s17  ;;  %1062 = vrot.lane.b32.xlu1 %v1045_v11, %s1518_s15  ;;  %v974_v48 = vadd.f32 %v971_v42, %v847_v38 }
 0x12b   :  { %v907_v22 = vmul.f32 %v2035_v52, %v891_v10  ;;  %v908_v23 = vmul.f32 %v2039_v12, %v891_v10  ;;  %v1088_v33 = vadd.f32 %v1082_v13, %v941_v32  ;;  %v1126_v42 = vrot.slane %v958_v59, 2 }
 0x12c   :  { %v524_v56 = vadd.f32 %v522_v3, %v1811_v4  ;;  %v525_v55 = vadd.f32 %v523_v57, %v1822_v16  ;;  %v986_v4 = vmul.f32 %v2072_v30, %v2035_v52  ;;  %v1089_v16 = vadd.f32 %v1083_v2, %v942_v46 }
 0x12d   :  { %v764_v63 = vpop.permute.xlu1 %763  ;;  %v863_v11 = vadd.f32 %v860_v49, %v2004_v15  ;;  %v988_v53 = vmul.f32 %v2072_v30, %v1999_v19  ;;  %v1131_v54 = vadd.f32 %v1125_v62, %v957_v18  ;;  %v1169_v8 = vrot.slane %v974_v48, 2  ;;  %v1010_v62 = vld [vmem:[%s2237_s2] ss:$8 sm:$0x3] }
 0x12e   :  { %v655_v44 = vadd.f32 %v653_v40, %v524_v56  ;;  %v656_v25 = vadd.f32 %v654_v61, %v525_v55  ;;  %v780_v21 = vmul.f32 %v1995_v51, %v764_v63  ;;  %v781_v24 = vmul.f32 %v2018_v20, %v764_v63  ;;  %1064 = vrot.lane.b32.xlu0 %v1046_v9, %s1518_s15 }
 0x12f   :  { %1107 = vrot.lane.b32.xlu1 %v1089_v16, %s1517_s14  ;;  %v989_v36 = vadd.f32 %v986_v4, %v862_v45  ;;  %v750_v50 = vmul.f32 %v1948_v34, %v1911_v6  ;;  %v751_v15 = vadd.f32 %v2077_v37, %v2027_v29  ;;  %v864_v51 = vadd.f32 %v2089_v1, %v2014_v26 }
 0x130   :  { %v782_v0 = vadd.f32 %v780_v21, %v655_v44  ;;  %v783_v38 = vadd.f32 %v781_v24, %v656_v25  ;;  %v876_v49 = vmul.f32 %v2029_v35, %v2018_v20  ;;  %v1002_v30 = vmul.f32 %v2054_v58, %v2035_v52 }
 0x131   :  { %v990_v45 = vadd.f32 %v987_v41, %v863_v11  ;;  %v1132_v60 = vadd.f32 %v1126_v42, %v958_v59  ;;  %v1168_v40 = vrot.slane %v973_v27, 2  ;;  %v626_v6 = vadd.f32 %v2024_v5, %v1903_v17 }
 0x132   :  { %v2125_v39 = vadd.f32 %v907_v22, %v782_v0  ;;  %v2127_v28 = vadd.f32 %v908_v23, %v783_v38  ;;  %1105 = vrot.lane.b32.xlu0 %v1088_v33, %s1517_s14  ;;  %v752_v34 = vadd.f32 %v2081_v43, %v2032_v7  ;;  %v877_v26 = vmul.f32 %v2029_v35, %v1946_v14  ;;  %v1455_v0 = vld [vmem:[%s2237_s2 + $0x1] ss:$8 sm:$0x3]  ;;  %v1456_v33 = vld [vmem:[%s2237_s2 + $0x2] ss:$8 sm:$0x3] }
 0x133   :  { %1148 = vrot.lane.b32.xlu1 %v1131_v54, %s1519_s16  ;;  %v878_v29 = vadd.f32 %v875_v47, %v751_v15  ;;  %v1003_v20 = vmul.f32 %v2054_v58, %v2039_v12  ;;  %v991_v37 = vadd.f32 %v988_v53, %v864_v51  ;;  %v1175_v52 = vadd.f32 %v1169_v8, %v974_v48 }
 0x134   :  { %v1211_v1 = vrot.slane %v989_v36, 2  ;;  %v753_v3 = vadd.f32 %v750_v50, %v626_v6  ;;  %v879_v57 = vadd.f32 %v876_v49, %v752_v34  ;;  %v1004_v17 = vmul.f32 %v2054_v58, %v1999_v19 }
 0x135   :  { %v1005_v5 = vadd.f32 %v1002_v30, %v878_v29  ;;  %v1174_v7 = vadd.f32 %v1168_v40, %v973_v27  ;;  %v1212_v43 = vrot.slane %v990_v45, 2  ;;  %v1213_v46 = vrot.slane %v991_v37, 2 }
 0x136   :  { %1150 = vrot.lane.b32.xlu0 %v1132_v60, %s1519_s16  ;;  %v880_v14 = vadd.f32 %v877_v26, %v753_v3  ;;  %v1006_v35 = vadd.f32 %v1003_v20, %v879_v57  ;;  %v1217_v12 = vadd.f32 %v1211_v1, %v989_v36  ;;  %v1020_v2 = vlaneseq  ;;  %v1459_v26 = vld [vmem:[%s2237_s2 + $0x5] ss:$8 sm:$0x3] }
 0x137   :  { %1193 = vrot.lane.b32.xlu1 %v1175_v52, %s1520_s17  ;;  %v1218_v18 = vadd.f32 %v1212_v43, %v990_v45  ;;  %v1254_v61 = vrot.slane %v1005_v5, 2  ;;  %v1219_v56 = vadd.f32 %v1213_v46, %v991_v37  ;;  %v1013_v24 = vrot.slane %v2125_v39, 2 }
 0x138   :  { %v1007_v32 = vadd.f32 %v1004_v17, %v880_v14  ;;  %v1255_v55 = vrot.slane %v1006_v35, 2  ;;  %v2156_v25 = vshrl.u32 %v1020_v2, 7  ;;  %v1014_v59 = vrot.slane %v2127_v28, 2 }
 0x139   :  { %v1260_v19 = vadd.f32 %v1254_v61, %v1005_v5  ;;  %v1017_v38 = vadd.f32 %v1013_v24, %v2125_v39  ;;  %v1457_v39 = vld [vmem:[%s2237_s2 + $0x3] ss:$8 sm:$0x3]  ;;  %v1009_v51 = vstv %s2162_s0  ;;  %v1460_v61 = vld [vmem:[%s2237_s2 + $0x6] ss:$8 sm:$0x3] }
 0x13a   :  { %1191 = vrot.lane.b32.xlu0 %v1174_v7, %s1520_s17  ;;  %v1256_v58 = vrot.slane %v1007_v32, 2  ;;  %v1261_v31 = vadd.f32 %v1255_v55, %v1006_v35  ;;  %v2160_v4 = vsub.s32 0, %v2156_v25  ;;  %v2169_v22 = vsub.s32 1, %v2156_v25 }
 0x13b   :  { %1234 = vrot.lane.b32.xlu1 %v1217_v12, %s1521_s18  ;;  %v1018_v42 = vadd.f32 %v1014_v59, %v2127_v28  ;;  %v1458_v28 = vld [vmem:[%s2237_s2 + $0x4] ss:$8 sm:$0x3] }
 0x13c   :  { %v1262_v48 = vadd.f32 %v1256_v58, %v1007_v32  ;;  %v1023_v27 = vrot.slane %v1010_v62, %v2160_v4  ;;  %v1027_v11 = vrot.slane %v1010_v62, %v2169_v22  ;;  %v1052_v47 = vrot.slane %v1455_v0, %v2160_v4 }
 0x13d   :  { %v1056_v54 = vrot.slane %v1455_v0, %v2169_v22  ;;  %v1095_v50 = vrot.slane %v1456_v33, %v2160_v4  ;;  %v1099_v30 = vrot.slane %v1456_v33, %v2169_v22  ;;  %v1138_v6 = vrot.slane %v1457_v39, %v2160_v4 }
 0x13e   :  { %1236 = vrot.lane.b32.xlu0 %v1218_v18, %s1521_s18  ;;  %v1030_v8 = vmul.f32 %v1023_v27, %v1017_v38  ;;  %v1031_v60 = vmul.f32 %v1027_v11, %v1018_v42  ;;  %v1142_v20 = vrot.slane %v1457_v39, %v2169_v22  ;;  %v1181_v52 = vrot.slane %v1458_v28, %v2160_v4 }
 0x13f   :  { %1238 = vrot.lane.b32.xlu1 %v1219_v56, %s1521_s18  ;;  %v1185_v7 = vrot.slane %v1458_v28, %v2169_v22  ;;  %v1224_v14 = vrot.slane %v1459_v26, %v2160_v4  ;;  %v1267_v2 = vrot.slane %v1460_v61, %v2160_v4  ;;  %v1271_v0 = vrot.slane %v1460_v61, %v2169_v22 }
 0x140   :  { %v1032_v3 = vadd.f32 %v1030_v8, %v1009_v51  ;;  %v1033_v35 = vadd.f32 %v1031_v60, %v1009_v51  ;;  %v1523_v60 = vmov 1966171168  }
 0x142   :  { %1277 = vrot.lane.b32.xlu0 %v1260_v19, %s1522_s19  ;;  %v1228_v19 = vrot.slane %v1459_v26, %v2169_v22 }
 0x143   :  { %1279 = vrot.lane.b32.xlu1 %v1261_v31, %s1522_s19 }
 0x146   :  { %1281 = vrot.lane.b32.xlu0 %v1262_v48, %s1522_s19 }
 0x194   :  { %v1067_v10 = vpop.permute.xlu1 %1066  ;;  %v1110_v63 = vpop.permute.xlu0 %1109 }
 0x198   :  { %v1153_v9 = vpop.permute.xlu1 %1152 }
 0x19c   :  { %v1196_v13 = vpop.permute.xlu0 %1195  ;;  %v1063_v44 = vpop.permute.xlu1 %1062 }
 0x1a0   :  { %v1065_v21 = vpop.permute.xlu0 %1064 }
 0x1a1   :  { %v1108_v16 = vpop.permute.xlu1 %1107  ;;  %v1069_v36 = vsel %vm1068_vm11, %v1063_v44, %v1065_v21  ;;  %v1070_v49 = vsel %vm1068_vm11, %v1065_v21, %v1067_v10 }
 0x1a2   :  { %v1073_v40 = vmul.f32 %v1069_v36, %v1052_v47  ;;  %v1113_v29 = vsel %vm1111_vm12, %v1108_v16, %v1110_v63  ;;  %v1074_v1 = vmul.f32 %v1070_v49, %v1056_v54 }
 0x1a3   :  { %v1117_v46 = vmul.f32 %v1113_v29, %v1099_v30 }
 0x1a4   :  { %v1106_v23 = vpop.permute.xlu0 %1105  ;;  %v1075_v12 = vadd.f32 %v1073_v40, %v1032_v3  ;;  %v1076_v58 = vadd.f32 %v1074_v1, %v1033_v35  ;;  %v1308_v40 = vunpack.c.l.s4 %v1523_v60 }
 0x1a5   :  { %v1149_v41 = vpop.permute.xlu1 %1148  ;;  %v1112_v45 = vsel %vm1111_vm12, %v1106_v23, %v1108_v16 }
 0x1a6   :  { %v1116_v57 = vmul.f32 %v1112_v45, %v1095_v50  ;;  %v1119_v44 = vadd.f32 %v1117_v46, %v1076_v58 }
 0x1a8   :  { %v1151_v53 = vpop.permute.xlu0 %1150  ;;  %v1118_v31 = vadd.f32 %v1116_v57, %v1075_v12 }
 0x1a9   :  { %v1194_v15 = vpop.permute.xlu1 %1193  ;;  %v1155_v37 = vsel %vm1154_vm13, %v1149_v41, %v1151_v53  ;;  %v1156_v5 = vsel %vm1154_vm13, %v1151_v53, %v1153_v9 }
 0x1aa   :  { %v1159_v32 = vmul.f32 %v1155_v37, %v1138_v6  ;;  %v1199_v56 = vsel %vm1197_vm14, %v1194_v15, %v1196_v13  ;;  %v1160_v48 = vmul.f32 %v1156_v5, %v1142_v20  ;;  %v1309_v6 = vunpack.c.0.s8 %v1308_v40  ;;  %v1302_v5 = vld [vmem:[%s2236_s1] sm:$0xff] }
 0x1ab   :  { %v1203_v24 = vmul.f32 %v1199_v56, %v1185_v7 }
 0x1ac   :  { %v1192_v34 = vpop.permute.xlu0 %1191  ;;  %v1161_v21 = vadd.f32 %v1159_v32, %v1118_v31  ;;  %v1162_v13 = vadd.f32 %v1160_v48, %v1119_v44  ;;  %v1312_v26 = vsub.s32 %v1309_v6, %v2156_v25  ;;  %v1303_v25 = vld [vmem:[%s2236_s1 + $0x8] sm:$0xff] }
 0x1ad   :  { %v1235_v17 = vpop.permute.xlu1 %1234  ;;  %v1198_v43 = vsel %vm1197_vm14, %v1192_v34, %v1194_v15 }
 0x1ae   :  { %v1202_v10 = vmul.f32 %v1198_v43, %v1181_v52  ;;  %v1205_v41 = vadd.f32 %v1203_v24, %v1162_v13 }
 0x1b0   :  { %v1237_v18 = vpop.permute.xlu0 %1236  ;;  %v1204_v59 = vadd.f32 %v1202_v10, %v1161_v21 }
 0x1b1   :  { %v1241_v55 = vsel %vm1240_vm15, %v1235_v17, %v1237_v18  ;;  %v1239_v63 = vpop.permute.xlu1 %1238 }
 0x1b2   :  { %v1242_v9 = vsel %vm1240_vm15, %v1237_v18, %v1239_v63  ;;  %v1245_v16 = vmul.f32 %v1241_v55, %v1224_v14 }
 0x1b3   :  { %v1246_v23 = vmul.f32 %v1242_v9, %v1228_v19 }
 0x1b4   :  { %v1278_v62 = vpop.permute.xlu0 %1277  ;;  %v1247_v33 = vadd.f32 %v1245_v16, %v1204_v59 }
 0x1b5   :  { %v1280_v38 = vpop.permute.xlu1 %1279  ;;  %v1248_v53 = vadd.f32 %v1246_v23, %v1205_v41 }
 0x1b6   :  { %v1284_v27 = vsel %vm1283_vm0, %v1278_v62, %v1280_v38 }
 0x1b7   :  { %v1288_v11 = vmul.f32 %v1284_v27, %v1267_v2 }
 0x1b8   :  { %v1282_v42 = vpop.permute.xlu0 %1281 }
 0x1b9   :  { %v1285_v47 = vsel %vm1283_vm0, %v1280_v38, %v1282_v42  ;;  %v1290_v39 = vadd.f32 %v1288_v11, %v1247_v33 }
 0x1ba   :  { %v1289_v36 = vmul.f32 %v1285_v47, %v1271_v0 }
 0x1bb   :  { %v1292_v8 = vsub.f32 0.0, %v1290_v39 }
 0x1bc   :  { %v1291_v54 = vadd.f32 %v1289_v36, %v1248_v53 }
 0x1bd   :  { %v1294_v28 = vmul.f32 1.442695, %v1292_v8 }
 0x1be   :  { %v1293_v50 = vsub.f32 0.0, %v1291_v54 }
 0x1bf   :  { %1484 = vpow2.f32 %v1294_v28 }
 0x1c0   :  { %v1296_v15 = vmul.f32 1.442695, %v1293_v50 }
 0x1c2   :  { %1486 = vpow2.f32 %v1296_v15 }
 0x1c9   :  { %v1485_v51 = vpop.eup %1484 }
 0x1ca   :  { %v1298_v49 = vadd.f32 1.0, %v1485_v51 }
 0x1cc   :  { %v1487_v30 = vpop.eup %1486  ;;  %1488 = vrcp.f32 %v1298_v49 }
 0x1cd   :  { %v1299_v45 = vadd.f32 1.0, %v1487_v30 }
 0x1cf   :  { %1490 = vrcp.f32 %v1299_v45 }
 0x1d6   :  { %v1489_v34 = vpop.eup %1488 }
 0x1d9   :  { %v1491_v29 = vpop.eup %1490 }
 0x1da   :  { %v1306_v20 = vcombine.low %v1489_v34, %v1491_v29 }
 0x1dc   :  { %v1313_v37 = vrot.slane %v1306_v20, %v1312_v26 }
 0x1de   :  { %v1314_v52 = vcombine.high %v1313_v37, %v1313_v37  ;;  %v1321_v1 = vrot.slane %v1313_v37, %v1312_v26 }
 0x1e0   :  { %v1328_v3 = vrot.slane %v1314_v52, %v1312_v26  ;;  %v1332_v57 = vrot.slane %v1321_v1, %v2160_v4  ;;  %v1336_v17 = vrot.slane %v1321_v1, %v2169_v22 }
 0x1e2   :  { %v1340_v7 = vrot.slane %v1328_v3, %v2160_v4  ;;  %v1344_v43 = vrot.slane %v1328_v3, %v2169_v22  ;;  %v1345_v14 = vcombine.low %v1332_v57, %v1336_v17 }
 0x1e4   :  { %v1346_v35 = vcombine.low %v1340_v7, %v1344_v43  ;;  %v1349_v12 = vmul.f32 %v1345_v14, %v1302_v5 }
 0x1e6   :  { %v1350_v46 = vmul.f32 %v1346_v35, %v1303_v25  ;;  %1351 = vst [vmem:[%s2238_s3] sm:$0xff] %v1349_v12 }
 0x1e8   :  { %1352 = vst [vmem:[%s2238_s3 + $0x8] sm:$0xff] %v1350_v46 }

</bundles_post_ra>
